<compile_context>
chip_gen: v7x
topology: tpu7x:2x2x1
jax: 0.10.0
libtpu: 0.0.40
codegen_flags: <defaults>
</compile_context>

<pallas_src>
import functools

import jax
import jax.numpy as jnp
from jax import lax
from jax.experimental import pallas as pl
from jax.experimental.pallas import tpu as pltpu

LN_EPS = 1e-5      # torch.nn.LayerNorm default
NEG_INF = -1e30    # finite "masked" value (avoids NaN for fully-masked rows)


def _round_up(x, m):
    return ((x + m - 1) // m) * m


def _pad_axis(a, axis, target):
    pad = target - a.shape[axis]
    if pad <= 0:
        return a
    widths = [(0, 0)] * a.ndim
    widths[axis] = (0, pad)
    return jnp.pad(a, widths)


def _layer_norm(x, gamma, beta, n):
    """One-pass LayerNorm; `n` is the TRUE feature width (padded lanes are 0,
    and zero-padded gamma/beta keep padded output lanes exactly 0)."""
    s = jnp.sum(x, axis=-1, keepdims=True)
    ss = jnp.sum(x * x, axis=-1, keepdims=True)
    mu = s * (1.0 / n)
    var = jnp.maximum(ss * (1.0 / n) - mu * mu, 0.0)
    return (x - mu) * lax.rsqrt(var + LN_EPS) * gamma + beta


def _encoder_stack_kernel(x_ref, npm_ref, am_ref,
                          wq_ref, bq_ref, wk_ref, bk_ref, wv_ref, bv_ref,
                          wo_ref, bo_ref, g1_ref, be1_ref,
                          w1_ref, b1_ref, w2_ref, b2_ref, g2_ref, be2_ref,
                          out_ref, attn_ref,
                          *, n_head, d_k, d_v, bt, seq_len, d_model,
                          weights_resident):
    layer = pl.program_id(1)
    # Layer selector into the weight refs: dynamic leading-axis index when the
    # whole stack is resident, 0 when weights are streamed one layer per step.
    lsel = layer if weights_resident else 0

    # out_ref's block index is constant across the innermost ("arbitrary")
    # layer axis, so it stays VMEM-resident and is the layer-to-layer
    # activation carry.  Correctness relies on the layer axis being innermost.
    @pl.when(layer == 0)
    def _():
        out_ref[...] = x_ref[...]

    x = out_ref[...]                    # (bt*L, Dp) f32 resident activation
    npm = npm_ref[...]                  # (bt*L, 1)  f32
    xb = x.astype(jnp.bfloat16)

    # ----- MultiHeadAttention (bf16 MXU, f32 accumulation/stats) -----
    scale = 1.0 / float(d_k) ** 0.5     # temperature folded into q
    q = (jnp.dot(xb, wq_ref[lsel], preferred_element_type=jnp.float32)
         + bq_ref[lsel]) * scale
    k = jnp.dot(xb, wk_ref[lsel], preferred_element_type=jnp.float32) + bk_ref[lsel]
    v = jnp.dot(xb, wv_ref[lsel], preferred_element_type=jnp.float32) + bv_ref[lsel]
    wo = wo_ref[lsel]                   # (n_head*d_v, Dp) bf16

    for b in range(bt):                 # static unroll over batch rows in tile
        rows = slice(b * seq_len, (b + 1) * seq_len)
        masked = am_ref[b].astype(jnp.int32) != 0      # (L, L) nonzero=masked
        for h in range(n_head):         # static unroll over heads
            qh = q[rows, h * d_k:(h + 1) * d_k].astype(jnp.bfloat16)
            kh = k[rows, h * d_k:(h + 1) * d_k].astype(jnp.bfloat16)
            vh = v[rows, h * d_v:(h + 1) * d_v].astype(jnp.bfloat16)
            # scores = qh @ kh.T without materializing the transpose
            s = lax.dot_general(qh, kh, (((1,), (1,)), ((), ())),
                                preferred_element_type=jnp.float32)
            s = jnp.where(masked, NEG_INF, s)          # masked_fill(mask, -inf)
            m = jnp.max(s, axis=-1, keepdims=True)
            p = jnp.exp(s - m)
            p = p * pl.reciprocal(jnp.sum(p, axis=-1, keepdims=True),
                                  approx=True)         # softmax(dim=-1)
            head = jnp.dot(p.astype(jnp.bfloat16), vh,
                           preferred_element_type=jnp.float32)
            # fold the output projection per head; accumulate straight into
            # the VMEM scratch row-slice (no concatenate, bounded live ranges)
            c = jnp.dot(head.astype(jnp.bfloat16), wo[h * d_v:(h + 1) * d_v, :],
                        preferred_element_type=jnp.float32)
            if h == 0:
                attn_ref[rows, :] = c
            else:
                attn_ref[rows, :] = attn_ref[rows, :] + c

    attn = attn_ref[...] + bo_ref[lsel]
    # dropout -> identity (eval)
    o1 = _layer_norm(attn + x, g1_ref[lsel], be1_ref[lsel], d_model) * npm

    # ----- PositionwiseFeedForward (Conv1d k=1 == per-position Linear) -----
    h1 = jnp.maximum(
        jnp.dot(o1.astype(jnp.bfloat16), w1_ref[lsel],
                preferred_element_type=jnp.float32) + b1_ref[lsel], 0.0)
    h2 = jnp.dot(h1.astype(jnp.bfloat16), w2_ref[lsel],
                 preferred_element_type=jnp.float32) + b2_ref[lsel]
    o2 = _layer_norm(h2 + o1, g2_ref[lsel], be2_ref[lsel], d_model) * npm

    out_ref[...] = o2                   # feeds the next layer (stays in VMEM)


def _vmem_capacity_bytes():
    try:
        return int(pltpu.get_tpu_info().vmem_capacity_bytes)
    except Exception:
        return 64 * 1024 * 1024         # conservative (v7x per-TC) fallback


def _is_multi_tensorcore():
    try:
        kind = jax.devices()[0].device_kind.lower()
    except Exception:
        return False
    return ("v7" in kind) or ("7x" in kind)


def _pick_batch_tile(B, L, *, max_rows=512, min_blocks=1):
    """Largest divisor bt of B with bt*L <= max_rows and >= min_blocks grid
    blocks (>= 2 only required on multi-TensorCore chips)."""
    best = 1
    for cand in range(1, B + 1):
        if B % cand:
            continue
        if cand * L <= max_rows and B // cand >= min_blocks:
            best = max(best, cand)
    return best


def trans_encoder_forward(enc_output, non_pad_mask, slf_attn_mask, layer_params,
                          *, n_head, d_k, d_v, batch_tile=None):
    """Mirrors Trans_Encoder_layer.forward (return_attns=False)."""
    B, L, D = enc_output.shape
    n_layers = len(layer_params)
    H = n_head * d_k
    Hv = n_head * d_v
    d_inner = layer_params[0]["w1"].shape[-1]
    Dp = _round_up(D, 128)
    DIp = _round_up(d_inner, 128)

    # --- mask: drop the redundant layer axis when it is layer-invariant ---
    if slf_attn_mask.ndim == 4:
        assert slf_attn_mask.shape == (n_layers, B, L, L)
        try:
            mask_shared = bool(jnp.all(slf_attn_mask == slf_attn_mask[:1]))
        except Exception:                           # e.g. under tracing
            mask_shared = False
        attn_mask = slf_attn_mask[0] if mask_shared else slf_attn_mask
    else:
        assert slf_attn_mask.shape == (B, L, L)
        mask_shared = True
        attn_mask = slf_attn_mask
    attn_mask = attn_mask.astype(jnp.int8)          # `.byte()`: nonzero=masked

    # --- hardware-aware tiling ---
    min_blocks = 2 if _is_multi_tensorcore() else 1
    bt = (_pick_batch_tile(B, L, max_rows=512, min_blocks=min_blocks)
          if batch_tile is None else batch_tile)
    if (bt * L) % 8 != 0 and bt != B:               # keep sublane-legal blocks
        bt = B
    assert B % bt == 0

    vmem_cap = _vmem_capacity_bytes()
    mat_elems = Dp * H * 2 + Dp * Hv + Hv * Dp + Dp * DIp + DIp * Dp
    vec_elems = 2 * H + Hv + 6 * Dp + DIp
    per_layer_w_bytes = mat_elems * 2 + vec_elems * 4     # bf16 mats + f32 vecs
    # Keep the full weight stack resident (DMA'd once for the whole grid) when
    # it comfortably fits; otherwise stream one layer of weights per step.
    weights_resident = 2 * n_layers * per_layer_w_bytes <= min(32 << 20,
                                                               vmem_cap // 3)

    act_bytes = bt * L * Dp * 4
    est_vmem = ((2 * n_layers if weights_resident else 4) * per_layer_w_bytes
                + 5 * act_bytes                      # x(2) + out(2) + attn scratch
                + 2 * bt * L * L                     # int8 mask (double-buffered)
                + bt * L * (3 * max(H, Hv) + DIp + 4 * Dp) * 4)  # live values
    vmem_limit = int(min(vmem_cap * 9 // 10, max(32 << 20, est_vmem * 3 // 2)))

    # --- stack per-layer weights, pad D / d_inner to lane-dense 128 multiples
    #     (zero padding + zero-padded gamma/beta keeps results exact) ---
    def prep(key, pads, dtype):
        arrs = []
        for p in layer_params:
            a = jnp.asarray(p[key], jnp.float32)
            for axis, tgt in pads:
                a = _pad_axis(a, axis, tgt)
            arrs.append(a.astype(dtype))
        return jnp.stack(arrs)

    bf16, f32 = jnp.bfloat16, jnp.float32
    stacked = dict(
        wq=prep("wq", [(0, Dp)], bf16), bq=prep("bq", [], f32),
        wk=prep("wk", [(0, Dp)], bf16), bk=prep("bk", [], f32),
        wv=prep("wv", [(0, Dp)], bf16), bv=prep("bv", [], f32),
        wo=prep("wo", [(1, Dp)], bf16), bo=prep("bo", [(1, Dp)], f32),
        ln1_g=prep("ln1_g", [(1, Dp)], f32), ln1_b=prep("ln1_b", [(1, Dp)], f32),
        w1=prep("w1", [(0, Dp), (1, DIp)], bf16), b1=prep("b1", [(1, DIp)], f32),
        w2=prep("w2", [(0, DIp), (1, Dp)], bf16), b2=prep("b2", [(1, Dp)], f32),
        ln2_g=prep("ln2_g", [(1, Dp)], f32), ln2_b=prep("ln2_b", [(1, Dp)], f32),
    )

    x_flat = _pad_axis(enc_output.astype(jnp.float32), 2, Dp).reshape(B * L, Dp)
    npm_flat = non_pad_mask.reshape(B * L, 1).astype(jnp.float32)

    kernel = functools.partial(_encoder_stack_kernel, n_head=n_head, d_k=d_k,
                               d_v=d_v, bt=bt, seq_len=L, d_model=D,
                               weights_resident=weights_resident)

    def wspec(shape):
        if weights_resident:
            # Block index constant over the whole grid -> single DMA.
            return pl.BlockSpec((n_layers,) + shape,
                                lambda i, l: (0,) * (1 + len(shape)))
        return pl.BlockSpec((1,) + shape,
                            lambda i, l: (l,) + (0,) * len(shape))

    if mask_shared:
        mask_spec = pl.BlockSpec((bt, L, L), lambda i, l: (i, 0, 0))
    else:
        mask_spec = pl.BlockSpec((None, bt, L, L), lambda i, l: (l, i, 0, 0))

    in_specs = [
        pl.BlockSpec((bt * L, Dp), lambda i, l: (i, 0)),     # x (read at l==0)
        pl.BlockSpec((bt * L, 1), lambda i, l: (i, 0)),      # non_pad_mask
        mask_spec,                                           # slf_attn_mask
        wspec((Dp, H)), wspec((1, H)),                       # w_qs
        wspec((Dp, H)), wspec((1, H)),                       # w_ks
        wspec((Dp, Hv)), wspec((1, Hv)),                     # w_vs
        wspec((Hv, Dp)), wspec((1, Dp)),                     # fc
        wspec((1, Dp)), wspec((1, Dp)),                      # layer_norm 1
        wspec((Dp, DIp)), wspec((1, DIp)),                   # ffn w_1
        wspec((DIp, Dp)), wspec((1, Dp)),                    # ffn w_2
        wspec((1, Dp)), wspec((1, Dp)),                      # layer_norm 2
    ]

    out_flat = pl.pallas_call(
        kernel,
        out_shape=jax.ShapeDtypeStruct((B * L, Dp), jnp.float32),
        grid_spec=pltpu.PrefetchScalarGridSpec(
            num_scalar_prefetch=0,
            grid=(B // bt, n_layers),        # layer axis MUST stay innermost
            in_specs=in_specs,
            out_specs=pl.BlockSpec((bt * L, Dp), lambda i, l: (i, 0)),
            scratch_shapes=[pltpu.VMEM((bt * L, Dp), jnp.float32)],
        ),
        compiler_params=pltpu.CompilerParams(
            dimension_semantics=("parallel", "arbitrary"),
            vmem_limit_bytes=vmem_limit),
    )(x_flat, npm_flat, attn_mask,
      stacked["wq"], stacked["bq"], stacked["wk"], stacked["bk"],
      stacked["wv"], stacked["bv"], stacked["wo"], stacked["bo"],
      stacked["ln1_g"], stacked["ln1_b"],
      stacked["w1"], stacked["b1"], stacked["w2"], stacked["b2"],
      stacked["ln2_g"], stacked["ln2_b"])

    return out_flat.reshape(B, L, Dp)[:, :, :D]


def init_layer_params(key, n_head, d_k, d_v, d_model, d_inner):
    ks = jax.random.split(key, 8)

    def nrm(k, shape, scale):
        return (scale * jax.random.normal(k, shape)).astype(jnp.float32)

    return {
        # nn.Linear weights stored transposed, i.e. as (in, out) matmul matrices.
        "wq": nrm(ks[0], (d_model, n_head * d_k), (2.0 / (d_model + d_k)) ** 0.5),
        "bq": jnp.zeros((1, n_head * d_k), jnp.float32),
        "wk": nrm(ks[1], (d_model, n_head * d_k), (2.0 / (d_model + d_k)) ** 0.5),
        "bk": jnp.zeros((1, n_head * d_k), jnp.float32),
        "wv": nrm(ks[2], (d_model, n_head * d_v), (2.0 / (d_model + d_v)) ** 0.5),
        "bv": jnp.zeros((1, n_head * d_v), jnp.float32),
        "wo": nrm(ks[3], (n_head * d_v, d_model),
                  (2.0 / (n_head * d_v + d_model)) ** 0.5),
        "bo": jnp.zeros((1, d_model), jnp.float32),
        "ln1_g": jnp.ones((1, d_model), jnp.float32),
        "ln1_b": jnp.zeros((1, d_model), jnp.float32),
        # Conv1d(d_model, d_inner, 1) -> (d_model, d_inner) matrix; same for w_2.
        "w1": nrm(ks[4], (d_model, d_inner), (2.0 / (d_model + d_inner)) ** 0.5),
        "b1": nrm(ks[5], (1, d_inner), 0.02),
        "w2": nrm(ks[6], (d_inner, d_model), (2.0 / (d_model + d_inner)) ** 0.5),
        "b2": nrm(ks[7], (1, d_model), 0.02),
        "ln2_g": jnp.ones((1, d_model), jnp.float32),
        "ln2_b": jnp.zeros((1, d_model), jnp.float32),
    }


if __name__ == "__main__":
    n_layers, n_head, d_k, d_v, d_model, d_inner = 2, 4, 8, 8, 32, 64
    B, L = 2, 8

    key = jax.random.PRNGKey(0)
    key, xk = jax.random.split(key)
    enc_output = jax.random.normal(xk, (B, L, d_model), dtype=jnp.float32)

    # non_pad_mask: (B, L, 1), last two positions of batch element 1 are padding.
    npm = jnp.ones((B, L, 1), jnp.float32)
    npm = npm.at[1, L - 2:, :].set(0.0)

    # slf_attn_mask: (n_layers, B, L, L); nonzero = masked key position.
    key_pad = jnp.zeros((B, L), jnp.float32).at[1, L - 2:].set(1.0)     # (B, L)
    per_layer = jnp.broadcast_to(key_pad[:, None, :], (B, L, L))        # (B, Lq, Lk)
    slf_attn_mask = jnp.broadcast_to(per_layer[None],
                                     (n_layers, B, L, L)).astype(jnp.float32)

    layer_params = [
        init_layer_params(jax.random.fold_in(key, i),
                          n_head, d_k, d_v, d_model, d_inner)
        for i in range(n_layers)
    ]

    out = trans_encoder_forward(enc_output, npm, slf_attn_mask, layer_params,
                                n_head=n_head, d_k=d_k, d_v=d_v)
    out = jax.block_until_ready(out)
    assert out.shape == (B, L, d_model)
    assert bool(jnp.all(jnp.isfinite(out)))
    print("KERNEL_OK")
</pallas_src>

<mosaic_0001>
module attributes {stable_mosaic.version = 11 : i64} {
  func.func @_encoder_stack_kernel(%arg0: i32, %arg1: i32, %arg2: memref<16x128xf32, #tpu.memory_space<vmem>>, %arg3: memref<16x1xf32, #tpu.memory_space<vmem>>, %arg4: memref<2x8x8xi8, #tpu.memory_space<vmem>>, %arg5: memref<2x128x32xbf16, #tpu.memory_space<vmem>>, %arg6: memref<2x1x32xf32, #tpu.memory_space<vmem>>, %arg7: memref<2x128x32xbf16, #tpu.memory_space<vmem>>, %arg8: memref<2x1x32xf32, #tpu.memory_space<vmem>>, %arg9: memref<2x128x32xbf16, #tpu.memory_space<vmem>>, %arg10: memref<2x1x32xf32, #tpu.memory_space<vmem>>, %arg11: memref<2x32x128xbf16, #tpu.memory_space<vmem>>, %arg12: memref<2x1x128xf32, #tpu.memory_space<vmem>>, %arg13: memref<2x1x128xf32, #tpu.memory_space<vmem>>, %arg14: memref<2x1x128xf32, #tpu.memory_space<vmem>>, %arg15: memref<2x128x128xbf16, #tpu.memory_space<vmem>>, %arg16: memref<2x1x128xf32, #tpu.memory_space<vmem>>, %arg17: memref<2x128x128xbf16, #tpu.memory_space<vmem>>, %arg18: memref<2x1x128xf32, #tpu.memory_space<vmem>>, %arg19: memref<2x1x128xf32, #tpu.memory_space<vmem>>, %arg20: memref<2x1x128xf32, #tpu.memory_space<vmem>>, %arg21: memref<16x128xf32, #tpu.memory_space<vmem>>, %arg22: memref<16x128xf32, #tpu.memory_space<vmem>>) attributes {dimension_semantics = [#tpu.dimension_semantics<parallel>, #tpu.dimension_semantics<arbitrary>], iteration_bounds = array<i64: 1, 2>, scalar_prefetch = 0 : i64, scratch_operands = 1 : i64, tpu.core_type = #tpu.core_type<tc>, window_params = [{transform_indices = @transform_0, window_bounds = array<i64: 16, 128>}, {transform_indices = @transform_1, window_bounds = array<i64: 16, 1>}, {transform_indices = @transform_2, window_bounds = array<i64: 2, 8, 8>}, {pipeline_mode = #tpu.pipeline_mode<synchronous>, transform_indices = @transform_3, window_bounds = array<i64: 2, 128, 32>}, {pipeline_mode = #tpu.pipeline_mode<synchronous>, transform_indices = @transform_4, window_bounds = array<i64: 2, 1, 32>}, {pipeline_mode = #tpu.pipeline_mode<synchronous>, transform_indices = @transform_5, window_bounds = array<i64: 2, 128, 32>}, {pipeline_mode = #tpu.pipeline_mode<synchronous>, transform_indices = @transform_6, window_bounds = array<i64: 2, 1, 32>}, {pipeline_mode = #tpu.pipeline_mode<synchronous>, transform_indices = @transform_7, window_bounds = array<i64: 2, 128, 32>}, {pipeline_mode = #tpu.pipeline_mode<synchronous>, transform_indices = @transform_8, window_bounds = array<i64: 2, 1, 32>}, {pipeline_mode = #tpu.pipeline_mode<synchronous>, transform_indices = @transform_9, window_bounds = array<i64: 2, 32, 128>}, {pipeline_mode = #tpu.pipeline_mode<synchronous>, transform_indices = @transform_10, window_bounds = array<i64: 2, 1, 128>}, {pipeline_mode = #tpu.pipeline_mode<synchronous>, transform_indices = @transform_11, window_bounds = array<i64: 2, 1, 128>}, {pipeline_mode = #tpu.pipeline_mode<synchronous>, transform_indices = @transform_12, window_bounds = array<i64: 2, 1, 128>}, {pipeline_mode = #tpu.pipeline_mode<synchronous>, transform_indices = @transform_13, window_bounds = array<i64: 2, 128, 128>}, {pipeline_mode = #tpu.pipeline_mode<synchronous>, transform_indices = @transform_14, window_bounds = array<i64: 2, 1, 128>}, {pipeline_mode = #tpu.pipeline_mode<synchronous>, transform_indices = @transform_15, window_bounds = array<i64: 2, 128, 128>}, {pipeline_mode = #tpu.pipeline_mode<synchronous>, transform_indices = @transform_16, window_bounds = array<i64: 2, 1, 128>}, {pipeline_mode = #tpu.pipeline_mode<synchronous>, transform_indices = @transform_17, window_bounds = array<i64: 2, 1, 128>}, {pipeline_mode = #tpu.pipeline_mode<synchronous>, transform_indices = @transform_18, window_bounds = array<i64: 2, 1, 128>}, {transform_indices = @transform_19, window_bounds = array<i64: 16, 128>}]} {
    %c0_i32 = arith.constant 0 : i32
    %0 = arith.cmpi eq, %arg1, %c0_i32 : i32
    %1 = arith.extui %0 : i1 to i32
    %c0_i32_0 = arith.constant 0 : i32
    %2 = arith.cmpi ne, %1, %c0_i32_0 : i32
    scf.if %2 {
      %c0_140 = arith.constant 0 : index
      %c0_141 = arith.constant 0 : index
      %355 = vector.load %arg2[%c0_140, %c0_141] : memref<16x128xf32, #tpu.memory_space<vmem>>, vector<16x128xf32>
      %c0_142 = arith.constant 0 : index
      %c0_143 = arith.constant 0 : index
      %356 = vector.load %arg21[%c0_142, %c0_143] : memref<16x128xf32, #tpu.memory_space<vmem>>, vector<16x128xf32>
      tpu.vector_store %arg21[%c0_142, %c0_143], %355 {strides = array<i32>} : memref<16x128xf32, #tpu.memory_space<vmem>>, vector<16x128xf32>,
    } else {
    }
    %c0 = arith.constant 0 : index
    %c0_1 = arith.constant 0 : index
    %3 = vector.load %arg21[%c0, %c0_1] : memref<16x128xf32, #tpu.memory_space<vmem>>, vector<16x128xf32>
    %c0_2 = arith.constant 0 : index
    %c0_3 = arith.constant 0 : index
    %4 = vector.load %arg3[%c0_2, %c0_3] : memref<16x1xf32, #tpu.memory_space<vmem>>, vector<16x1xf32>
    %5 = arith.truncf %3 : vector<16x128xf32> to vector<16x128xbf16>
    %6 = arith.index_cast %arg1 : i32 to index
    %c0_4 = arith.constant 0 : index
    %c0_5 = arith.constant 0 : index
    %7 = vector.load %arg5[%6, %c0_4, %c0_5] : memref<2x128x32xbf16, #tpu.memory_space<vmem>>, vector<1x128x32xbf16>
    %8 = vector.shape_cast %7 : vector<1x128x32xbf16> to vector<128x32xbf16>
    %cst = arith.constant dense<0.000000e+00> : vector<16x32xf32>
    %9 = tpu.matmul %5, %8, %cst {dimension_numbers = #tpu.dot_dimension_numbers<[1], [0], [0], [1], [0, 0, 1, 1], [], []>} : vector<16x128xbf16>, vector<128x32xbf16>, vector<16x32xf32> -> vector<16x32xf32>
    %10 = arith.index_cast %arg1 : i32 to index
    %c0_6 = arith.constant 0 : index
    %c0_7 = arith.constant 0 : index
    %11 = vector.load %arg6[%10, %c0_6, %c0_7] : memref<2x1x32xf32, #tpu.memory_space<vmem>>, vector<1x1x32xf32>
    %12 = vector.shape_cast %11 : vector<1x1x32xf32> to vector<1x32xf32>
    %13 = vector.broadcast %12 : vector<1x32xf32> to vector<16x32xf32>
    %14 = arith.addf %9, %13 : vector<16x32xf32>
    %cst_8 = arith.constant 0.353553385 : f32
    %15 = vector.broadcast %cst_8 : f32 to vector<16x32xf32>
    %16 = arith.mulf %14, %15 : vector<16x32xf32>
    %17 = arith.index_cast %arg1 : i32 to index
    %c0_9 = arith.constant 0 : index
    %c0_10 = arith.constant 0 : index
    %18 = vector.load %arg7[%17, %c0_9, %c0_10] : memref<2x128x32xbf16, #tpu.memory_space<vmem>>, vector<1x128x32xbf16>
    %19 = vector.shape_cast %18 : vector<1x128x32xbf16> to vector<128x32xbf16>
    %cst_11 = arith.constant dense<0.000000e+00> : vector<16x32xf32>
    %20 = tpu.matmul %5, %19, %cst_11 {dimension_numbers = #tpu.dot_dimension_numbers<[1], [0], [0], [1], [0, 0, 1, 1], [], []>} : vector<16x128xbf16>, vector<128x32xbf16>, vector<16x32xf32> -> vector<16x32xf32>
    %21 = arith.index_cast %arg1 : i32 to index
    %c0_12 = arith.constant 0 : index
    %c0_13 = arith.constant 0 : index
    %22 = vector.load %arg8[%21, %c0_12, %c0_13] : memref<2x1x32xf32, #tpu.memory_space<vmem>>, vector<1x1x32xf32>
    %23 = vector.shape_cast %22 : vector<1x1x32xf32> to vector<1x32xf32>
    %24 = vector.broadcast %23 : vector<1x32xf32> to vector<16x32xf32>
    %25 = arith.addf %20, %24 : vector<16x32xf32>
    %26 = arith.index_cast %arg1 : i32 to index
    %c0_14 = arith.constant 0 : index
    %c0_15 = arith.constant 0 : index
    %27 = vector.load %arg9[%26, %c0_14, %c0_15] : memref<2x128x32xbf16, #tpu.memory_space<vmem>>, vector<1x128x32xbf16>
    %28 = vector.shape_cast %27 : vector<1x128x32xbf16> to vector<128x32xbf16>
    %cst_16 = arith.constant dense<0.000000e+00> : vector<16x32xf32>
    %29 = tpu.matmul %5, %28, %cst_16 {dimension_numbers = #tpu.dot_dimension_numbers<[1], [0], [0], [1], [0, 0, 1, 1], [], []>} : vector<16x128xbf16>, vector<128x32xbf16>, vector<16x32xf32> -> vector<16x32xf32>
    %30 = arith.index_cast %arg1 : i32 to index
    %c0_17 = arith.constant 0 : index
    %c0_18 = arith.constant 0 : index
    %31 = vector.load %arg10[%30, %c0_17, %c0_18] : memref<2x1x32xf32, #tpu.memory_space<vmem>>, vector<1x1x32xf32>
    %32 = vector.shape_cast %31 : vector<1x1x32xf32> to vector<1x32xf32>
    %33 = vector.broadcast %32 : vector<1x32xf32> to vector<16x32xf32>
    %34 = arith.addf %29, %33 : vector<16x32xf32>
    %35 = arith.index_cast %arg1 : i32 to index
    %c0_19 = arith.constant 0 : index
    %c0_20 = arith.constant 0 : index
    %36 = vector.load %arg11[%35, %c0_19, %c0_20] : memref<2x32x128xbf16, #tpu.memory_space<vmem>>, vector<1x32x128xbf16>
    %37 = vector.shape_cast %36 : vector<1x32x128xbf16> to vector<32x128xbf16>
    %c0_21 = arith.constant 0 : index
    %c0_22 = arith.constant 0 : index
    %c0_23 = arith.constant 0 : index
    %38 = vector.load %arg4[%c0_21, %c0_22, %c0_23] : memref<2x8x8xi8, #tpu.memory_space<vmem>>, vector<1x8x8xi8>
    %39 = vector.shape_cast %38 : vector<1x8x8xi8> to vector<8x8xi8>
    %40 = arith.extsi %39 : vector<8x8xi8> to vector<8x8xi32>
    %c0_i32_24 = arith.constant 0 : i32
    %41 = vector.broadcast %c0_i32_24 : i32 to vector<8x8xi32>
    %42 = arith.cmpi ne, %40, %41 : vector<8x8xi32>
    %43 = vector.extract_strided_slice %16 {offsets = [0, 0], sizes = [8, 8], strides = [1, 1]} : vector<16x32xf32> to vector<8x8xf32>
    %44 = arith.truncf %43 : vector<8x8xf32> to vector<8x8xbf16>
    %45 = vector.extract_strided_slice %25 {offsets = [0, 0], sizes = [8, 8], strides = [1, 1]} : vector<16x32xf32> to vector<8x8xf32>
    %46 = arith.truncf %45 : vector<8x8xf32> to vector<8x8xbf16>
    %47 = vector.extract_strided_slice %34 {offsets = [0, 0], sizes = [8, 8], strides = [1, 1]} : vector<16x32xf32> to vector<8x8xf32>
    %48 = arith.truncf %47 : vector<8x8xf32> to vector<8x8xbf16>
    %cst_25 = arith.constant dense<0.000000e+00> : vector<8x8xf32>
    %49 = tpu.matmul %44, %46, %cst_25 {dimension_numbers = #tpu.dot_dimension_numbers<[1], [1], [0], [0], [0, 0, 1, 0], [], []>} : vector<8x8xbf16>, vector<8x8xbf16>, vector<8x8xf32> -> vector<8x8xf32>
    %cst_26 = arith.constant -1.000000e+30 : f32
    %50 = vector.broadcast %cst_26 : f32 to vector<8x8xf32>
    %51 = arith.select %42, %50, %49 : vector<8x8xi1>, vector<8x8xf32>
    %cst_27 = arith.constant dense<0xFF800000> : vector<8xf32>
    %52 = vector.multi_reduction <maximumf>, %51, %cst_27 [1] : vector<8x8xf32> to vector<8xf32>
    %53 = vector.shape_cast %52 : vector<8xf32> to vector<8x1xf32>
    %54 = vector.broadcast %53 : vector<8x1xf32> to vector<8x8xf32>
    %55 = arith.subf %51, %54 : vector<8x8xf32>
    %56 = math.exp %55 : vector<8x8xf32>
    %cst_28 = arith.constant dense<0.000000e+00> : vector<8xf32>
    %57 = vector.multi_reduction <add>, %56, %cst_28 [1] : vector<8x8xf32> to vector<8xf32>
    %58 = vector.shape_cast %57 : vector<8xf32> to vector<8x1xf32>
    %59 = tpu.reciprocal %58 {approx = true} : vector<8x1xf32> -> vector<8x1xf32>
    %60 = vector.broadcast %59 : vector<8x1xf32> to vector<8x8xf32>
    %61 = arith.mulf %56, %60 : vector<8x8xf32>
    %62 = arith.truncf %61 : vector<8x8xf32> to vector<8x8xbf16>
    %cst_29 = arith.constant dense<0.000000e+00> : vector<8x8xf32>
    %63 = tpu.matmul %62, %48, %cst_29 {dimension_numbers = #tpu.dot_dimension_numbers<[1], [0], [0], [1], [0, 0, 1, 1], [], []>} : vector<8x8xbf16>, vector<8x8xbf16>, vector<8x8xf32> -> vector<8x8xf32>
    %64 = arith.truncf %63 : vector<8x8xf32> to vector<8x8xbf16>
    %65 = vector.extract_strided_slice %37 {offsets = [0, 0], sizes = [8, 128], strides = [1, 1]} : vector<32x128xbf16> to vector<8x128xbf16>
    %cst_30 = arith.constant dense<0.000000e+00> : vector<8x128xf32>
    %66 = tpu.matmul %64, %65, %cst_30 {dimension_numbers = #tpu.dot_dimension_numbers<[1], [0], [0], [1], [0, 0, 1, 1], [], []>} : vector<8x8xbf16>, vector<8x128xbf16>, vector<8x128xf32> -> vector<8x128xf32>
    %c0_31 = arith.constant 0 : index
    %c0_32 = arith.constant 0 : index
    %67 = vector.load %arg22[%c0_31, %c0_32] : memref<16x128xf32, #tpu.memory_space<vmem>>, vector<8x128xf32>
    tpu.vector_store %arg22[%c0_31, %c0_32], %66 {strides = array<i32>} : memref<16x128xf32, #tpu.memory_space<vmem>>, vector<8x128xf32>,
    %68 = vector.extract_strided_slice %16 {offsets = [0, 8], sizes = [8, 8], strides = [1, 1]} : vector<16x32xf32> to vector<8x8xf32>
    %69 = arith.truncf %68 : vector<8x8xf32> to vector<8x8xbf16>
    %70 = vector.extract_strided_slice %25 {offsets = [0, 8], sizes = [8, 8], strides = [1, 1]} : vector<16x32xf32> to vector<8x8xf32>
    %71 = arith.truncf %70 : vector<8x8xf32> to vector<8x8xbf16>
    %72 = vector.extract_strided_slice %34 {offsets = [0, 8], sizes = [8, 8], strides = [1, 1]} : vector<16x32xf32> to vector<8x8xf32>
    %73 = arith.truncf %72 : vector<8x8xf32> to vector<8x8xbf16>
    %cst_33 = arith.constant dense<0.000000e+00> : vector<8x8xf32>
    %74 = tpu.matmul %69, %71, %cst_33 {dimension_numbers = #tpu.dot_dimension_numbers<[1], [1], [0], [0], [0, 0, 1, 0], [], []>} : vector<8x8xbf16>, vector<8x8xbf16>, vector<8x8xf32> -> vector<8x8xf32>
    %cst_34 = arith.constant -1.000000e+30 : f32
    %75 = vector.broadcast %cst_34 : f32 to vector<8x8xf32>
    %76 = arith.select %42, %75, %74 : vector<8x8xi1>, vector<8x8xf32>
    %cst_35 = arith.constant dense<0xFF800000> : vector<8xf32>
    %77 = vector.multi_reduction <maximumf>, %76, %cst_35 [1] : vector<8x8xf32> to vector<8xf32>
    %78 = vector.shape_cast %77 : vector<8xf32> to vector<8x1xf32>
    %79 = vector.broadcast %78 : vector<8x1xf32> to vector<8x8xf32>
    %80 = arith.subf %76, %79 : vector<8x8xf32>
    %81 = math.exp %80 : vector<8x8xf32>
    %cst_36 = arith.constant dense<0.000000e+00> : vector<8xf32>
    %82 = vector.multi_reduction <add>, %81, %cst_36 [1] : vector<8x8xf32> to vector<8xf32>
    %83 = vector.shape_cast %82 : vector<8xf32> to vector<8x1xf32>
    %84 = tpu.reciprocal %83 {approx = true} : vector<8x1xf32> -> vector<8x1xf32>
    %85 = vector.broadcast %84 : vector<8x1xf32> to vector<8x8xf32>
    %86 = arith.mulf %81, %85 : vector<8x8xf32>
    %87 = arith.truncf %86 : vector<8x8xf32> to vector<8x8xbf16>
    %cst_37 = arith.constant dense<0.000000e+00> : vector<8x8xf32>
    %88 = tpu.matmul %87, %73, %cst_37 {dimension_numbers = #tpu.dot_dimension_numbers<[1], [0], [0], [1], [0, 0, 1, 1], [], []>} : vector<8x8xbf16>, vector<8x8xbf16>, vector<8x8xf32> -> vector<8x8xf32>
    %89 = arith.truncf %88 : vector<8x8xf32> to vector<8x8xbf16>
    %90 = vector.extract_strided_slice %37 {offsets = [8, 0], sizes = [8, 128], strides = [1, 1]} : vector<32x128xbf16> to vector<8x128xbf16>
    %cst_38 = arith.constant dense<0.000000e+00> : vector<8x128xf32>
    %91 = tpu.matmul %89, %90, %cst_38 {dimension_numbers = #tpu.dot_dimension_numbers<[1], [0], [0], [1], [0, 0, 1, 1], [], []>} : vector<8x8xbf16>, vector<8x128xbf16>, vector<8x128xf32> -> vector<8x128xf32>
    %c0_39 = arith.constant 0 : index
    %c0_40 = arith.constant 0 : index
    %92 = vector.load %arg22[%c0_39, %c0_40] : memref<16x128xf32, #tpu.memory_space<vmem>>, vector<8x128xf32>
    %93 = arith.addf %92, %91 : vector<8x128xf32>
    %c0_41 = arith.constant 0 : index
    %c0_42 = arith.constant 0 : index
    %94 = vector.load %arg22[%c0_41, %c0_42] : memref<16x128xf32, #tpu.memory_space<vmem>>, vector<8x128xf32>
    tpu.vector_store %arg22[%c0_41, %c0_42], %93 {strides = array<i32>} : memref<16x128xf32, #tpu.memory_space<vmem>>, vector<8x128xf32>,
    %95 = vector.extract_strided_slice %16 {offsets = [0, 16], sizes = [8, 8], strides = [1, 1]} : vector<16x32xf32> to vector<8x8xf32>
    %96 = arith.truncf %95 : vector<8x8xf32> to vector<8x8xbf16>
    %97 = vector.extract_strided_slice %25 {offsets = [0, 16], sizes = [8, 8], strides = [1, 1]} : vector<16x32xf32> to vector<8x8xf32>
    %98 = arith.truncf %97 : vector<8x8xf32> to vector<8x8xbf16>
    %99 = vector.extract_strided_slice %34 {offsets = [0, 16], sizes = [8, 8], strides = [1, 1]} : vector<16x32xf32> to vector<8x8xf32>
    %100 = arith.truncf %99 : vector<8x8xf32> to vector<8x8xbf16>
    %cst_43 = arith.constant dense<0.000000e+00> : vector<8x8xf32>
    %101 = tpu.matmul %96, %98, %cst_43 {dimension_numbers = #tpu.dot_dimension_numbers<[1], [1], [0], [0], [0, 0, 1, 0], [], []>} : vector<8x8xbf16>, vector<8x8xbf16>, vector<8x8xf32> -> vector<8x8xf32>
    %cst_44 = arith.constant -1.000000e+30 : f32
    %102 = vector.broadcast %cst_44 : f32 to vector<8x8xf32>
    %103 = arith.select %42, %102, %101 : vector<8x8xi1>, vector<8x8xf32>
    %cst_45 = arith.constant dense<0xFF800000> : vector<8xf32>
    %104 = vector.multi_reduction <maximumf>, %103, %cst_45 [1] : vector<8x8xf32> to vector<8xf32>
    %105 = vector.shape_cast %104 : vector<8xf32> to vector<8x1xf32>
    %106 = vector.broadcast %105 : vector<8x1xf32> to vector<8x8xf32>
    %107 = arith.subf %103, %106 : vector<8x8xf32>
    %108 = math.exp %107 : vector<8x8xf32>
    %cst_46 = arith.constant dense<0.000000e+00> : vector<8xf32>
    %109 = vector.multi_reduction <add>, %108, %cst_46 [1] : vector<8x8xf32> to vector<8xf32>
    %110 = vector.shape_cast %109 : vector<8xf32> to vector<8x1xf32>
    %111 = tpu.reciprocal %110 {approx = true} : vector<8x1xf32> -> vector<8x1xf32>
    %112 = vector.broadcast %111 : vector<8x1xf32> to vector<8x8xf32>
    %113 = arith.mulf %108, %112 : vector<8x8xf32>
    %114 = arith.truncf %113 : vector<8x8xf32> to vector<8x8xbf16>
    %cst_47 = arith.constant dense<0.000000e+00> : vector<8x8xf32>
    %115 = tpu.matmul %114, %100, %cst_47 {dimension_numbers = #tpu.dot_dimension_numbers<[1], [0], [0], [1], [0, 0, 1, 1], [], []>} : vector<8x8xbf16>, vector<8x8xbf16>, vector<8x8xf32> -> vector<8x8xf32>
    %116 = arith.truncf %115 : vector<8x8xf32> to vector<8x8xbf16>
    %117 = vector.extract_strided_slice %37 {offsets = [16, 0], sizes = [8, 128], strides = [1, 1]} : vector<32x128xbf16> to vector<8x128xbf16>
    %cst_48 = arith.constant dense<0.000000e+00> : vector<8x128xf32>
    %118 = tpu.matmul %116, %117, %cst_48 {dimension_numbers = #tpu.dot_dimension_numbers<[1], [0], [0], [1], [0, 0, 1, 1], [], []>} : vector<8x8xbf16>, vector<8x128xbf16>, vector<8x128xf32> -> vector<8x128xf32>
    %c0_49 = arith.constant 0 : index
    %c0_50 = arith.constant 0 : index
    %119 = vector.load %arg22[%c0_49, %c0_50] : memref<16x128xf32, #tpu.memory_space<vmem>>, vector<8x128xf32>
    %120 = arith.addf %119, %118 : vector<8x128xf32>
    %c0_51 = arith.constant 0 : index
    %c0_52 = arith.constant 0 : index
    %121 = vector.load %arg22[%c0_51, %c0_52] : memref<16x128xf32, #tpu.memory_space<vmem>>, vector<8x128xf32>
    tpu.vector_store %arg22[%c0_51, %c0_52], %120 {strides = array<i32>} : memref<16x128xf32, #tpu.memory_space<vmem>>, vector<8x128xf32>,
    %122 = vector.extract_strided_slice %16 {offsets = [0, 24], sizes = [8, 8], strides = [1, 1]} : vector<16x32xf32> to vector<8x8xf32>
    %123 = arith.truncf %122 : vector<8x8xf32> to vector<8x8xbf16>
    %124 = vector.extract_strided_slice %25 {offsets = [0, 24], sizes = [8, 8], strides = [1, 1]} : vector<16x32xf32> to vector<8x8xf32>
    %125 = arith.truncf %124 : vector<8x8xf32> to vector<8x8xbf16>
    %126 = vector.extract_strided_slice %34 {offsets = [0, 24], sizes = [8, 8], strides = [1, 1]} : vector<16x32xf32> to vector<8x8xf32>
    %127 = arith.truncf %126 : vector<8x8xf32> to vector<8x8xbf16>
    %cst_53 = arith.constant dense<0.000000e+00> : vector<8x8xf32>
    %128 = tpu.matmul %123, %125, %cst_53 {dimension_numbers = #tpu.dot_dimension_numbers<[1], [1], [0], [0], [0, 0, 1, 0], [], []>} : vector<8x8xbf16>, vector<8x8xbf16>, vector<8x8xf32> -> vector<8x8xf32>
    %cst_54 = arith.constant -1.000000e+30 : f32
    %129 = vector.broadcast %cst_54 : f32 to vector<8x8xf32>
    %130 = arith.select %42, %129, %128 : vector<8x8xi1>, vector<8x8xf32>
    %cst_55 = arith.constant dense<0xFF800000> : vector<8xf32>
    %131 = vector.multi_reduction <maximumf>, %130, %cst_55 [1] : vector<8x8xf32> to vector<8xf32>
    %132 = vector.shape_cast %131 : vector<8xf32> to vector<8x1xf32>
    %133 = vector.broadcast %132 : vector<8x1xf32> to vector<8x8xf32>
    %134 = arith.subf %130, %133 : vector<8x8xf32>
    %135 = math.exp %134 : vector<8x8xf32>
    %cst_56 = arith.constant dense<0.000000e+00> : vector<8xf32>
    %136 = vector.multi_reduction <add>, %135, %cst_56 [1] : vector<8x8xf32> to vector<8xf32>
    %137 = vector.shape_cast %136 : vector<8xf32> to vector<8x1xf32>
    %138 = tpu.reciprocal %137 {approx = true} : vector<8x1xf32> -> vector<8x1xf32>
    %139 = vector.broadcast %138 : vector<8x1xf32> to vector<8x8xf32>
    %140 = arith.mulf %135, %139 : vector<8x8xf32>
    %141 = arith.truncf %140 : vector<8x8xf32> to vector<8x8xbf16>
    %cst_57 = arith.constant dense<0.000000e+00> : vector<8x8xf32>
    %142 = tpu.matmul %141, %127, %cst_57 {dimension_numbers = #tpu.dot_dimension_numbers<[1], [0], [0], [1], [0, 0, 1, 1], [], []>} : vector<8x8xbf16>, vector<8x8xbf16>, vector<8x8xf32> -> vector<8x8xf32>
    %143 = arith.truncf %142 : vector<8x8xf32> to vector<8x8xbf16>
    %144 = vector.extract_strided_slice %37 {offsets = [24, 0], sizes = [8, 128], strides = [1, 1]} : vector<32x128xbf16> to vector<8x128xbf16>
    %cst_58 = arith.constant dense<0.000000e+00> : vector<8x128xf32>
    %145 = tpu.matmul %143, %144, %cst_58 {dimension_numbers = #tpu.dot_dimension_numbers<[1], [0], [0], [1], [0, 0, 1, 1], [], []>} : vector<8x8xbf16>, vector<8x128xbf16>, vector<8x128xf32> -> vector<8x128xf32>
    %c0_59 = arith.constant 0 : index
    %c0_60 = arith.constant 0 : index
    %146 = vector.load %arg22[%c0_59, %c0_60] : memref<16x128xf32, #tpu.memory_space<vmem>>, vector<8x128xf32>
    %147 = arith.addf %146, %145 : vector<8x128xf32>
    %c0_61 = arith.constant 0 : index
    %c0_62 = arith.constant 0 : index
    %148 = vector.load %arg22[%c0_61, %c0_62] : memref<16x128xf32, #tpu.memory_space<vmem>>, vector<8x128xf32>
    tpu.vector_store %arg22[%c0_61, %c0_62], %147 {strides = array<i32>} : memref<16x128xf32, #tpu.memory_space<vmem>>, vector<8x128xf32>,
    %c1 = arith.constant 1 : index
    %c0_63 = arith.constant 0 : index
    %c0_64 = arith.constant 0 : index
    %149 = vector.load %arg4[%c1, %c0_63, %c0_64] : memref<2x8x8xi8, #tpu.memory_space<vmem>>, vector<1x8x8xi8>
    %150 = vector.shape_cast %149 : vector<1x8x8xi8> to vector<8x8xi8>
    %151 = arith.extsi %150 : vector<8x8xi8> to vector<8x8xi32>
    %c0_i32_65 = arith.constant 0 : i32
    %152 = vector.broadcast %c0_i32_65 : i32 to vector<8x8xi32>
    %153 = arith.cmpi ne, %151, %152 : vector<8x8xi32>
    %154 = vector.extract_strided_slice %16 {offsets = [8, 0], sizes = [8, 8], strides = [1, 1]} : vector<16x32xf32> to vector<8x8xf32>
    %155 = arith.truncf %154 : vector<8x8xf32> to vector<8x8xbf16>
    %156 = vector.extract_strided_slice %25 {offsets = [8, 0], sizes = [8, 8], strides = [1, 1]} : vector<16x32xf32> to vector<8x8xf32>
    %157 = arith.truncf %156 : vector<8x8xf32> to vector<8x8xbf16>
    %158 = vector.extract_strided_slice %34 {offsets = [8, 0], sizes = [8, 8], strides = [1, 1]} : vector<16x32xf32> to vector<8x8xf32>
    %159 = arith.truncf %158 : vector<8x8xf32> to vector<8x8xbf16>
    %cst_66 = arith.constant dense<0.000000e+00> : vector<8x8xf32>
    %160 = tpu.matmul %155, %157, %cst_66 {dimension_numbers = #tpu.dot_dimension_numbers<[1], [1], [0], [0], [0, 0, 1, 0], [], []>} : vector<8x8xbf16>, vector<8x8xbf16>, vector<8x8xf32> -> vector<8x8xf32>
    %cst_67 = arith.constant -1.000000e+30 : f32
    %161 = vector.broadcast %cst_67 : f32 to vector<8x8xf32>
    %162 = arith.select %153, %161, %160 : vector<8x8xi1>, vector<8x8xf32>
    %cst_68 = arith.constant dense<0xFF800000> : vector<8xf32>
    %163 = vector.multi_reduction <maximumf>, %162, %cst_68 [1] : vector<8x8xf32> to vector<8xf32>
    %164 = vector.shape_cast %163 : vector<8xf32> to vector<8x1xf32>
    %165 = vector.broadcast %164 : vector<8x1xf32> to vector<8x8xf32>
    %166 = arith.subf %162, %165 : vector<8x8xf32>
    %167 = math.exp %166 : vector<8x8xf32>
    %cst_69 = arith.constant dense<0.000000e+00> : vector<8xf32>
    %168 = vector.multi_reduction <add>, %167, %cst_69 [1] : vector<8x8xf32> to vector<8xf32>
    %169 = vector.shape_cast %168 : vector<8xf32> to vector<8x1xf32>
    %170 = tpu.reciprocal %169 {approx = true} : vector<8x1xf32> -> vector<8x1xf32>
    %171 = vector.broadcast %170 : vector<8x1xf32> to vector<8x8xf32>
    %172 = arith.mulf %167, %171 : vector<8x8xf32>
    %173 = arith.truncf %172 : vector<8x8xf32> to vector<8x8xbf16>
    %cst_70 = arith.constant dense<0.000000e+00> : vector<8x8xf32>
    %174 = tpu.matmul %173, %159, %cst_70 {dimension_numbers = #tpu.dot_dimension_numbers<[1], [0], [0], [1], [0, 0, 1, 1], [], []>} : vector<8x8xbf16>, vector<8x8xbf16>, vector<8x8xf32> -> vector<8x8xf32>
    %175 = arith.truncf %174 : vector<8x8xf32> to vector<8x8xbf16>
    %176 = vector.extract_strided_slice %37 {offsets = [0, 0], sizes = [8, 128], strides = [1, 1]} : vector<32x128xbf16> to vector<8x128xbf16>
    %cst_71 = arith.constant dense<0.000000e+00> : vector<8x128xf32>
    %177 = tpu.matmul %175, %176, %cst_71 {dimension_numbers = #tpu.dot_dimension_numbers<[1], [0], [0], [1], [0, 0, 1, 1], [], []>} : vector<8x8xbf16>, vector<8x128xbf16>, vector<8x128xf32> -> vector<8x128xf32>
    %c8 = arith.constant 8 : index
    %c0_72 = arith.constant 0 : index
    %178 = vector.load %arg22[%c8, %c0_72] : memref<16x128xf32, #tpu.memory_space<vmem>>, vector<8x128xf32>
    tpu.vector_store %arg22[%c8, %c0_72], %177 {strides = array<i32>} : memref<16x128xf32, #tpu.memory_space<vmem>>, vector<8x128xf32>,
    %179 = vector.extract_strided_slice %16 {offsets = [8, 8], sizes = [8, 8], strides = [1, 1]} : vector<16x32xf32> to vector<8x8xf32>
    %180 = arith.truncf %179 : vector<8x8xf32> to vector<8x8xbf16>
    %181 = vector.extract_strided_slice %25 {offsets = [8, 8], sizes = [8, 8], strides = [1, 1]} : vector<16x32xf32> to vector<8x8xf32>
    %182 = arith.truncf %181 : vector<8x8xf32> to vector<8x8xbf16>
    %183 = vector.extract_strided_slice %34 {offsets = [8, 8], sizes = [8, 8], strides = [1, 1]} : vector<16x32xf32> to vector<8x8xf32>
    %184 = arith.truncf %183 : vector<8x8xf32> to vector<8x8xbf16>
    %cst_73 = arith.constant dense<0.000000e+00> : vector<8x8xf32>
    %185 = tpu.matmul %180, %182, %cst_73 {dimension_numbers = #tpu.dot_dimension_numbers<[1], [1], [0], [0], [0, 0, 1, 0], [], []>} : vector<8x8xbf16>, vector<8x8xbf16>, vector<8x8xf32> -> vector<8x8xf32>
    %cst_74 = arith.constant -1.000000e+30 : f32
    %186 = vector.broadcast %cst_74 : f32 to vector<8x8xf32>
    %187 = arith.select %153, %186, %185 : vector<8x8xi1>, vector<8x8xf32>
    %cst_75 = arith.constant dense<0xFF800000> : vector<8xf32>
    %188 = vector.multi_reduction <maximumf>, %187, %cst_75 [1] : vector<8x8xf32> to vector<8xf32>
    %189 = vector.shape_cast %188 : vector<8xf32> to vector<8x1xf32>
    %190 = vector.broadcast %189 : vector<8x1xf32> to vector<8x8xf32>
    %191 = arith.subf %187, %190 : vector<8x8xf32>
    %192 = math.exp %191 : vector<8x8xf32>
    %cst_76 = arith.constant dense<0.000000e+00> : vector<8xf32>
    %193 = vector.multi_reduction <add>, %192, %cst_76 [1] : vector<8x8xf32> to vector<8xf32>
    %194 = vector.shape_cast %193 : vector<8xf32> to vector<8x1xf32>
    %195 = tpu.reciprocal %194 {approx = true} : vector<8x1xf32> -> vector<8x1xf32>
    %196 = vector.broadcast %195 : vector<8x1xf32> to vector<8x8xf32>
    %197 = arith.mulf %192, %196 : vector<8x8xf32>
    %198 = arith.truncf %197 : vector<8x8xf32> to vector<8x8xbf16>
    %cst_77 = arith.constant dense<0.000000e+00> : vector<8x8xf32>
    %199 = tpu.matmul %198, %184, %cst_77 {dimension_numbers = #tpu.dot_dimension_numbers<[1], [0], [0], [1], [0, 0, 1, 1], [], []>} : vector<8x8xbf16>, vector<8x8xbf16>, vector<8x8xf32> -> vector<8x8xf32>
    %200 = arith.truncf %199 : vector<8x8xf32> to vector<8x8xbf16>
    %201 = vector.extract_strided_slice %37 {offsets = [8, 0], sizes = [8, 128], strides = [1, 1]} : vector<32x128xbf16> to vector<8x128xbf16>
    %cst_78 = arith.constant dense<0.000000e+00> : vector<8x128xf32>
    %202 = tpu.matmul %200, %201, %cst_78 {dimension_numbers = #tpu.dot_dimension_numbers<[1], [0], [0], [1], [0, 0, 1, 1], [], []>} : vector<8x8xbf16>, vector<8x128xbf16>, vector<8x128xf32> -> vector<8x128xf32>
    %c8_79 = arith.constant 8 : index
    %c0_80 = arith.constant 0 : index
    %203 = vector.load %arg22[%c8_79, %c0_80] : memref<16x128xf32, #tpu.memory_space<vmem>>, vector<8x128xf32>
    %204 = arith.addf %203, %202 : vector<8x128xf32>
    %c8_81 = arith.constant 8 : index
    %c0_82 = arith.constant 0 : index
    %205 = vector.load %arg22[%c8_81, %c0_82] : memref<16x128xf32, #tpu.memory_space<vmem>>, vector<8x128xf32>
    tpu.vector_store %arg22[%c8_81, %c0_82], %204 {strides = array<i32>} : memref<16x128xf32, #tpu.memory_space<vmem>>, vector<8x128xf32>,
    %206 = vector.extract_strided_slice %16 {offsets = [8, 16], sizes = [8, 8], strides = [1, 1]} : vector<16x32xf32> to vector<8x8xf32>
    %207 = arith.truncf %206 : vector<8x8xf32> to vector<8x8xbf16>
    %208 = vector.extract_strided_slice %25 {offsets = [8, 16], sizes = [8, 8], strides = [1, 1]} : vector<16x32xf32> to vector<8x8xf32>
    %209 = arith.truncf %208 : vector<8x8xf32> to vector<8x8xbf16>
    %210 = vector.extract_strided_slice %34 {offsets = [8, 16], sizes = [8, 8], strides = [1, 1]} : vector<16x32xf32> to vector<8x8xf32>
    %211 = arith.truncf %210 : vector<8x8xf32> to vector<8x8xbf16>
    %cst_83 = arith.constant dense<0.000000e+00> : vector<8x8xf32>
    %212 = tpu.matmul %207, %209, %cst_83 {dimension_numbers = #tpu.dot_dimension_numbers<[1], [1], [0], [0], [0, 0, 1, 0], [], []>} : vector<8x8xbf16>, vector<8x8xbf16>, vector<8x8xf32> -> vector<8x8xf32>
    %cst_84 = arith.constant -1.000000e+30 : f32
    %213 = vector.broadcast %cst_84 : f32 to vector<8x8xf32>
    %214 = arith.select %153, %213, %212 : vector<8x8xi1>, vector<8x8xf32>
    %cst_85 = arith.constant dense<0xFF800000> : vector<8xf32>
    %215 = vector.multi_reduction <maximumf>, %214, %cst_85 [1] : vector<8x8xf32> to vector<8xf32>
    %216 = vector.shape_cast %215 : vector<8xf32> to vector<8x1xf32>
    %217 = vector.broadcast %216 : vector<8x1xf32> to vector<8x8xf32>
    %218 = arith.subf %214, %217 : vector<8x8xf32>
    %219 = math.exp %218 : vector<8x8xf32>
    %cst_86 = arith.constant dense<0.000000e+00> : vector<8xf32>
    %220 = vector.multi_reduction <add>, %219, %cst_86 [1] : vector<8x8xf32> to vector<8xf32>
    %221 = vector.shape_cast %220 : vector<8xf32> to vector<8x1xf32>
    %222 = tpu.reciprocal %221 {approx = true} : vector<8x1xf32> -> vector<8x1xf32>
    %223 = vector.broadcast %222 : vector<8x1xf32> to vector<8x8xf32>
    %224 = arith.mulf %219, %223 : vector<8x8xf32>
    %225 = arith.truncf %224 : vector<8x8xf32> to vector<8x8xbf16>
    %cst_87 = arith.constant dense<0.000000e+00> : vector<8x8xf32>
    %226 = tpu.matmul %225, %211, %cst_87 {dimension_numbers = #tpu.dot_dimension_numbers<[1], [0], [0], [1], [0, 0, 1, 1], [], []>} : vector<8x8xbf16>, vector<8x8xbf16>, vector<8x8xf32> -> vector<8x8xf32>
    %227 = arith.truncf %226 : vector<8x8xf32> to vector<8x8xbf16>
    %228 = vector.extract_strided_slice %37 {offsets = [16, 0], sizes = [8, 128], strides = [1, 1]} : vector<32x128xbf16> to vector<8x128xbf16>
    %cst_88 = arith.constant dense<0.000000e+00> : vector<8x128xf32>
    %229 = tpu.matmul %227, %228, %cst_88 {dimension_numbers = #tpu.dot_dimension_numbers<[1], [0], [0], [1], [0, 0, 1, 1], [], []>} : vector<8x8xbf16>, vector<8x128xbf16>, vector<8x128xf32> -> vector<8x128xf32>
    %c8_89 = arith.constant 8 : index
    %c0_90 = arith.constant 0 : index
    %230 = vector.load %arg22[%c8_89, %c0_90] : memref<16x128xf32, #tpu.memory_space<vmem>>, vector<8x128xf32>
    %231 = arith.addf %230, %229 : vector<8x128xf32>
    %c8_91 = arith.constant 8 : index
    %c0_92 = arith.constant 0 : index
    %232 = vector.load %arg22[%c8_91, %c0_92] : memref<16x128xf32, #tpu.memory_space<vmem>>, vector<8x128xf32>
    tpu.vector_store %arg22[%c8_91, %c0_92], %231 {strides = array<i32>} : memref<16x128xf32, #tpu.memory_space<vmem>>, vector<8x128xf32>,
    %233 = vector.extract_strided_slice %16 {offsets = [8, 24], sizes = [8, 8], strides = [1, 1]} : vector<16x32xf32> to vector<8x8xf32>
    %234 = arith.truncf %233 : vector<8x8xf32> to vector<8x8xbf16>
    %235 = vector.extract_strided_slice %25 {offsets = [8, 24], sizes = [8, 8], strides = [1, 1]} : vector<16x32xf32> to vector<8x8xf32>
    %236 = arith.truncf %235 : vector<8x8xf32> to vector<8x8xbf16>
    %237 = vector.extract_strided_slice %34 {offsets = [8, 24], sizes = [8, 8], strides = [1, 1]} : vector<16x32xf32> to vector<8x8xf32>
    %238 = arith.truncf %237 : vector<8x8xf32> to vector<8x8xbf16>
    %cst_93 = arith.constant dense<0.000000e+00> : vector<8x8xf32>
    %239 = tpu.matmul %234, %236, %cst_93 {dimension_numbers = #tpu.dot_dimension_numbers<[1], [1], [0], [0], [0, 0, 1, 0], [], []>} : vector<8x8xbf16>, vector<8x8xbf16>, vector<8x8xf32> -> vector<8x8xf32>
    %cst_94 = arith.constant -1.000000e+30 : f32
    %240 = vector.broadcast %cst_94 : f32 to vector<8x8xf32>
    %241 = arith.select %153, %240, %239 : vector<8x8xi1>, vector<8x8xf32>
    %cst_95 = arith.constant dense<0xFF800000> : vector<8xf32>
    %242 = vector.multi_reduction <maximumf>, %241, %cst_95 [1] : vector<8x8xf32> to vector<8xf32>
    %243 = vector.shape_cast %242 : vector<8xf32> to vector<8x1xf32>
    %244 = vector.broadcast %243 : vector<8x1xf32> to vector<8x8xf32>
    %245 = arith.subf %241, %244 : vector<8x8xf32>
    %246 = math.exp %245 : vector<8x8xf32>
    %cst_96 = arith.constant dense<0.000000e+00> : vector<8xf32>
    %247 = vector.multi_reduction <add>, %246, %cst_96 [1] : vector<8x8xf32> to vector<8xf32>
    %248 = vector.shape_cast %247 : vector<8xf32> to vector<8x1xf32>
    %249 = tpu.reciprocal %248 {approx = true} : vector<8x1xf32> -> vector<8x1xf32>
    %250 = vector.broadcast %249 : vector<8x1xf32> to vector<8x8xf32>
    %251 = arith.mulf %246, %250 : vector<8x8xf32>
    %252 = arith.truncf %251 : vector<8x8xf32> to vector<8x8xbf16>
    %cst_97 = arith.constant dense<0.000000e+00> : vector<8x8xf32>
    %253 = tpu.matmul %252, %238, %cst_97 {dimension_numbers = #tpu.dot_dimension_numbers<[1], [0], [0], [1], [0, 0, 1, 1], [], []>} : vector<8x8xbf16>, vector<8x8xbf16>, vector<8x8xf32> -> vector<8x8xf32>
    %254 = arith.truncf %253 : vector<8x8xf32> to vector<8x8xbf16>
    %255 = vector.extract_strided_slice %37 {offsets = [24, 0], sizes = [8, 128], strides = [1, 1]} : vector<32x128xbf16> to vector<8x128xbf16>
    %cst_98 = arith.constant dense<0.000000e+00> : vector<8x128xf32>
    %256 = tpu.matmul %254, %255, %cst_98 {dimension_numbers = #tpu.dot_dimension_numbers<[1], [0], [0], [1], [0, 0, 1, 1], [], []>} : vector<8x8xbf16>, vector<8x128xbf16>, vector<8x128xf32> -> vector<8x128xf32>
    %c8_99 = arith.constant 8 : index
    %c0_100 = arith.constant 0 : index
    %257 = vector.load %arg22[%c8_99, %c0_100] : memref<16x128xf32, #tpu.memory_space<vmem>>, vector<8x128xf32>
    %258 = arith.addf %257, %256 : vector<8x128xf32>
    %c8_101 = arith.constant 8 : index
    %c0_102 = arith.constant 0 : index
    %259 = vector.load %arg22[%c8_101, %c0_102] : memref<16x128xf32, #tpu.memory_space<vmem>>, vector<8x128xf32>
    tpu.vector_store %arg22[%c8_101, %c0_102], %258 {strides = array<i32>} : memref<16x128xf32, #tpu.memory_space<vmem>>, vector<8x128xf32>,
    %c0_103 = arith.constant 0 : index
    %c0_104 = arith.constant 0 : index
    %260 = vector.load %arg22[%c0_103, %c0_104] : memref<16x128xf32, #tpu.memory_space<vmem>>, vector<16x128xf32>
    %261 = arith.index_cast %arg1 : i32 to index
    %c0_105 = arith.constant 0 : index
    %c0_106 = arith.constant 0 : index
    %262 = vector.load %arg12[%261, %c0_105, %c0_106] : memref<2x1x128xf32, #tpu.memory_space<vmem>>, vector<1x1x128xf32>
    %263 = vector.shape_cast %262 : vector<1x1x128xf32> to vector<1x128xf32>
    %264 = vector.broadcast %263 : vector<1x128xf32> to vector<16x128xf32>
    %265 = arith.addf %260, %264 : vector<16x128xf32>
    %266 = arith.addf %265, %3 : vector<16x128xf32>
    %267 = arith.index_cast %arg1 : i32 to index
    %c0_107 = arith.constant 0 : index
    %c0_108 = arith.constant 0 : index
    %268 = vector.load %arg13[%267, %c0_107, %c0_108] : memref<2x1x128xf32, #tpu.memory_space<vmem>>, vector<1x1x128xf32>
    %269 = vector.shape_cast %268 : vector<1x1x128xf32> to vector<1x128xf32>
    %270 = arith.index_cast %arg1 : i32 to index
    %c0_109 = arith.constant 0 : index
    %c0_110 = arith.constant 0 : index
    %271 = vector.load %arg14[%270, %c0_109, %c0_110] : memref<2x1x128xf32, #tpu.memory_space<vmem>>, vector<1x1x128xf32>
    %272 = vector.shape_cast %271 : vector<1x1x128xf32> to vector<1x128xf32>
    %cst_111 = arith.constant dense<0.000000e+00> : vector<16xf32>
    %273 = vector.multi_reduction <add>, %266, %cst_111 [1] : vector<16x128xf32> to vector<16xf32>
    %274 = vector.shape_cast %273 : vector<16xf32> to vector<16x1xf32>
    %275 = arith.mulf %266, %266 : vector<16x128xf32>
    %cst_112 = arith.constant dense<0.000000e+00> : vector<16xf32>
    %276 = vector.multi_reduction <add>, %275, %cst_112 [1] : vector<16x128xf32> to vector<16xf32>
    %277 = vector.shape_cast %276 : vector<16xf32> to vector<16x1xf32>
    %cst_113 = arith.constant 3.125000e-02 : f32
    %278 = vector.broadcast %cst_113 : f32 to vector<16x1xf32>
    %279 = arith.mulf %274, %278 : vector<16x1xf32>
    %cst_114 = arith.constant 3.125000e-02 : f32
    %280 = vector.broadcast %cst_114 : f32 to vector<16x1xf32>
    %281 = arith.mulf %277, %280 : vector<16x1xf32>
    %282 = arith.mulf %279, %279 : vector<16x1xf32>
    %283 = arith.subf %281, %282 : vector<16x1xf32>
    %cst_115 = arith.constant 0.000000e+00 : f32
    %284 = vector.broadcast %cst_115 : f32 to vector<16x1xf32>
    %285 = arith.maximumf %283, %284 : vector<16x1xf32>
    %286 = vector.broadcast %279 : vector<16x1xf32> to vector<16x128xf32>
    %287 = arith.subf %266, %286 : vector<16x128xf32>
    %cst_116 = arith.constant 9.99999974E-6 : f32
    %288 = vector.broadcast %cst_116 : f32 to vector<16x1xf32>
    %289 = arith.addf %285, %288 : vector<16x1xf32>
    %290 = math.rsqrt %289 : vector<16x1xf32>
    %291 = vector.broadcast %290 : vector<16x1xf32> to vector<16x128xf32>
    %292 = arith.mulf %287, %291 : vector<16x128xf32>
    %293 = vector.broadcast %269 : vector<1x128xf32> to vector<16x128xf32>
    %294 = arith.mulf %292, %293 : vector<16x128xf32>
    %295 = vector.broadcast %272 : vector<1x128xf32> to vector<16x128xf32>
    %296 = arith.addf %294, %295 : vector<16x128xf32>
    %297 = vector.broadcast %4 : vector<16x1xf32> to vector<16x128xf32>
    %298 = arith.mulf %296, %297 : vector<16x128xf32>
    %299 = arith.truncf %298 : vector<16x128xf32> to vector<16x128xbf16>
    %300 = arith.index_cast %arg1 : i32 to index
    %c0_117 = arith.constant 0 : index
    %c0_118 = arith.constant 0 : index
    %301 = vector.load %arg15[%300, %c0_117, %c0_118] : memref<2x128x128xbf16, #tpu.memory_space<vmem>>, vector<1x128x128xbf16>
    %302 = vector.shape_cast %301 : vector<1x128x128xbf16> to vector<128x128xbf16>
    %cst_119 = arith.constant dense<0.000000e+00> : vector<16x128xf32>
    %303 = tpu.matmul %299, %302, %cst_119 {dimension_numbers = #tpu.dot_dimension_numbers<[1], [0], [0], [1], [0, 0, 1, 1], [], []>} : vector<16x128xbf16>, vector<128x128xbf16>, vector<16x128xf32> -> vector<16x128xf32>
    %304 = arith.index_cast %arg1 : i32 to index
    %c0_120 = arith.constant 0 : index
    %c0_121 = arith.constant 0 : index
    %305 = vector.load %arg16[%304, %c0_120, %c0_121] : memref<2x1x128xf32, #tpu.memory_space<vmem>>, vector<1x1x128xf32>
    %306 = vector.shape_cast %305 : vector<1x1x128xf32> to vector<1x128xf32>
    %307 = vector.broadcast %306 : vector<1x128xf32> to vector<16x128xf32>
    %308 = arith.addf %303, %307 : vector<16x128xf32>
    %cst_122 = arith.constant 0.000000e+00 : f32
    %309 = vector.broadcast %cst_122 : f32 to vector<16x128xf32>
    %310 = arith.maximumf %308, %309 : vector<16x128xf32>
    %311 = arith.truncf %310 : vector<16x128xf32> to vector<16x128xbf16>
    %312 = arith.index_cast %arg1 : i32 to index
    %c0_123 = arith.constant 0 : index
    %c0_124 = arith.constant 0 : index
    %313 = vector.load %arg17[%312, %c0_123, %c0_124] : memref<2x128x128xbf16, #tpu.memory_space<vmem>>, vector<1x128x128xbf16>
    %314 = vector.shape_cast %313 : vector<1x128x128xbf16> to vector<128x128xbf16>
    %cst_125 = arith.constant dense<0.000000e+00> : vector<16x128xf32>
    %315 = tpu.matmul %311, %314, %cst_125 {dimension_numbers = #tpu.dot_dimension_numbers<[1], [0], [0], [1], [0, 0, 1, 1], [], []>} : vector<16x128xbf16>, vector<128x128xbf16>, vector<16x128xf32> -> vector<16x128xf32>
    %316 = arith.index_cast %arg1 : i32 to index
    %c0_126 = arith.constant 0 : index
    %c0_127 = arith.constant 0 : index
    %317 = vector.load %arg18[%316, %c0_126, %c0_127] : memref<2x1x128xf32, #tpu.memory_space<vmem>>, vector<1x1x128xf32>
    %318 = vector.shape_cast %317 : vector<1x1x128xf32> to vector<1x128xf32>
    %319 = vector.broadcast %318 : vector<1x128xf32> to vector<16x128xf32>
    %320 = arith.addf %315, %319 : vector<16x128xf32>
    %321 = arith.addf %320, %298 : vector<16x128xf32>
    %322 = arith.index_cast %arg1 : i32 to index
    %c0_128 = arith.constant 0 : index
    %c0_129 = arith.constant 0 : index
    %323 = vector.load %arg19[%322, %c0_128, %c0_129] : memref<2x1x128xf32, #tpu.memory_space<vmem>>, vector<1x1x128xf32>
    %324 = vector.shape_cast %323 : vector<1x1x128xf32> to vector<1x128xf32>
    %325 = arith.index_cast %arg1 : i32 to index
    %c0_130 = arith.constant 0 : index
    %c0_131 = arith.constant 0 : index
    %326 = vector.load %arg20[%325, %c0_130, %c0_131] : memref<2x1x128xf32, #tpu.memory_space<vmem>>, vector<1x1x128xf32>
    %327 = vector.shape_cast %326 : vector<1x1x128xf32> to vector<1x128xf32>
    %cst_132 = arith.constant dense<0.000000e+00> : vector<16xf32>
    %328 = vector.multi_reduction <add>, %321, %cst_132 [1] : vector<16x128xf32> to vector<16xf32>
    %329 = vector.shape_cast %328 : vector<16xf32> to vector<16x1xf32>
    %330 = arith.mulf %321, %321 : vector<16x128xf32>
    %cst_133 = arith.constant dense<0.000000e+00> : vector<16xf32>
    %331 = vector.multi_reduction <add>, %330, %cst_133 [1] : vector<16x128xf32> to vector<16xf32>
    %332 = vector.shape_cast %331 : vector<16xf32> to vector<16x1xf32>
    %cst_134 = arith.constant 3.125000e-02 : f32
    %333 = vector.broadcast %cst_134 : f32 to vector<16x1xf32>
    %334 = arith.mulf %329, %333 : vector<16x1xf32>
    %cst_135 = arith.constant 3.125000e-02 : f32
    %335 = vector.broadcast %cst_135 : f32 to vector<16x1xf32>
    %336 = arith.mulf %332, %335 : vector<16x1xf32>
    %337 = arith.mulf %334, %334 : vector<16x1xf32>
    %338 = arith.subf %336, %337 : vector<16x1xf32>
    %cst_136 = arith.constant 0.000000e+00 : f32
    %339 = vector.broadcast %cst_136 : f32 to vector<16x1xf32>
    %340 = arith.maximumf %338, %339 : vector<16x1xf32>
    %341 = vector.broadcast %334 : vector<16x1xf32> to vector<16x128xf32>
    %342 = arith.subf %321, %341 : vector<16x128xf32>
    %cst_137 = arith.constant 9.99999974E-6 : f32
    %343 = vector.broadcast %cst_137 : f32 to vector<16x1xf32>
    %344 = arith.addf %340, %343 : vector<16x1xf32>
    %345 = math.rsqrt %344 : vector<16x1xf32>
    %346 = vector.broadcast %345 : vector<16x1xf32> to vector<16x128xf32>
    %347 = arith.mulf %342, %346 : vector<16x128xf32>
    %348 = vector.broadcast %324 : vector<1x128xf32> to vector<16x128xf32>
    %349 = arith.mulf %347, %348 : vector<16x128xf32>
    %350 = vector.broadcast %327 : vector<1x128xf32> to vector<16x128xf32>
    %351 = arith.addf %349, %350 : vector<16x128xf32>
    %352 = vector.broadcast %4 : vector<16x1xf32> to vector<16x128xf32>
    %353 = arith.mulf %351, %352 : vector<16x128xf32>
    %c0_138 = arith.constant 0 : index
    %c0_139 = arith.constant 0 : index
    %354 = vector.load %arg21[%c0_138, %c0_139] : memref<16x128xf32, #tpu.memory_space<vmem>>, vector<16x128xf32>
    tpu.vector_store %arg21[%c0_138, %c0_139], %353 {strides = array<i32>} : memref<16x128xf32, #tpu.memory_space<vmem>>, vector<16x128xf32>,
    return
  }
  func.func @transform_0(%arg0: i32, %arg1: i32) -> (i32, i32) {
    %c0_i32 = arith.constant 0 : i32
    %c0_i32_0 = arith.constant 0 : i32
    return %arg0, %c0_i32 : i32, i32
  }
  func.func @transform_1(%arg0: i32, %arg1: i32) -> (i32, i32) {
    %c0_i32 = arith.constant 0 : i32
    %c0_i32_0 = arith.constant 0 : i32
    return %arg0, %c0_i32 : i32, i32
  }
  func.func @transform_2(%arg0: i32, %arg1: i32) -> (i32, i32, i32) {
    %c0_i32 = arith.constant 0 : i32
    %c0_i32_0 = arith.constant 0 : i32
    %c0_i32_1 = arith.constant 0 : i32
    return %arg0, %c0_i32, %c0_i32_0 : i32, i32, i32
  }
  func.func @transform_3(%arg0: i32, %arg1: i32) -> (i32, i32, i32) {
    %c0_i32 = arith.constant 0 : i32
    %c0_i32_0 = arith.constant 0 : i32
    %c0_i32_1 = arith.constant 0 : i32
    %c0_i32_2 = arith.constant 0 : i32
    return %c0_i32, %c0_i32_0, %c0_i32_1 : i32, i32, i32
  }
  func.func @transform_4(%arg0: i32, %arg1: i32) -> (i32, i32, i32) {
    %c0_i32 = arith.constant 0 : i32
    %c0_i32_0 = arith.constant 0 : i32
    %c0_i32_1 = arith.constant 0 : i32
    %c0_i32_2 = arith.constant 0 : i32
    return %c0_i32, %c0_i32_0, %c0_i32_1 : i32, i32, i32
  }
  func.func @transform_5(%arg0: i32, %arg1: i32) -> (i32, i32, i32) {
    %c0_i32 = arith.constant 0 : i32
    %c0_i32_0 = arith.constant 0 : i32
    %c0_i32_1 = arith.constant 0 : i32
    %c0_i32_2 = arith.constant 0 : i32
    return %c0_i32, %c0_i32_0, %c0_i32_1 : i32, i32, i32
  }
  func.func @transform_6(%arg0: i32, %arg1: i32) -> (i32, i32, i32) {
    %c0_i32 = arith.constant 0 : i32
    %c0_i32_0 = arith.constant 0 : i32
    %c0_i32_1 = arith.constant 0 : i32
    %c0_i32_2 = arith.constant 0 : i32
    return %c0_i32, %c0_i32_0, %c0_i32_1 : i32, i32, i32
  }
  func.func @transform_7(%arg0: i32, %arg1: i32) -> (i32, i32, i32) {
    %c0_i32 = arith.constant 0 : i32
    %c0_i32_0 = arith.constant 0 : i32
    %c0_i32_1 = arith.constant 0 : i32
    %c0_i32_2 = arith.constant 0 : i32
    return %c0_i32, %c0_i32_0, %c0_i32_1 : i32, i32, i32
  }
  func.func @transform_8(%arg0: i32, %arg1: i32) -> (i32, i32, i32) {
    %c0_i32 = arith.constant 0 : i32
    %c0_i32_0 = arith.constant 0 : i32
    %c0_i32_1 = arith.constant 0 : i32
    %c0_i32_2 = arith.constant 0 : i32
    return %c0_i32, %c0_i32_0, %c0_i32_1 : i32, i32, i32
  }
  func.func @transform_9(%arg0: i32, %arg1: i32) -> (i32, i32, i32) {
    %c0_i32 = arith.constant 0 : i32
    %c0_i32_0 = arith.constant 0 : i32
    %c0_i32_1 = arith.constant 0 : i32
    %c0_i32_2 = arith.constant 0 : i32
    return %c0_i32, %c0_i32_0, %c0_i32_1 : i32, i32, i32
  }
  func.func @transform_10(%arg0: i32, %arg1: i32) -> (i32, i32, i32) {
    %c0_i32 = arith.constant 0 : i32
    %c0_i32_0 = arith.constant 0 : i32
    %c0_i32_1 = arith.constant 0 : i32
    %c0_i32_2 = arith.constant 0 : i32
    return %c0_i32, %c0_i32_0, %c0_i32_1 : i32, i32, i32
  }
  func.func @transform_11(%arg0: i32, %arg1: i32) -> (i32, i32, i32) {
    %c0_i32 = arith.constant 0 : i32
    %c0_i32_0 = arith.constant 0 : i32
    %c0_i32_1 = arith.constant 0 : i32
    %c0_i32_2 = arith.constant 0 : i32
    return %c0_i32, %c0_i32_0, %c0_i32_1 : i32, i32, i32
  }
  func.func @transform_12(%arg0: i32, %arg1: i32) -> (i32, i32, i32) {
    %c0_i32 = arith.constant 0 : i32
    %c0_i32_0 = arith.constant 0 : i32
    %c0_i32_1 = arith.constant 0 : i32
    %c0_i32_2 = arith.constant 0 : i32
    return %c0_i32, %c0_i32_0, %c0_i32_1 : i32, i32, i32
  }
  func.func @transform_13(%arg0: i32, %arg1: i32) -> (i32, i32, i32) {
    %c0_i32 = arith.constant 0 : i32
    %c0_i32_0 = arith.constant 0 : i32
    %c0_i32_1 = arith.constant 0 : i32
    %c0_i32_2 = arith.constant 0 : i32
    return %c0_i32, %c0_i32_0, %c0_i32_1 : i32, i32, i32
  }
  func.func @transform_14(%arg0: i32, %arg1: i32) -> (i32, i32, i32) {
    %c0_i32 = arith.constant 0 : i32
    %c0_i32_0 = arith.constant 0 : i32
    %c0_i32_1 = arith.constant 0 : i32
    %c0_i32_2 = arith.constant 0 : i32
    return %c0_i32, %c0_i32_0, %c0_i32_1 : i32, i32, i32
  }
  func.func @transform_15(%arg0: i32, %arg1: i32) -> (i32, i32, i32) {
    %c0_i32 = arith.constant 0 : i32
    %c0_i32_0 = arith.constant 0 : i32
    %c0_i32_1 = arith.constant 0 : i32
    %c0_i32_2 = arith.constant 0 : i32
    return %c0_i32, %c0_i32_0, %c0_i32_1 : i32, i32, i32
  }
  func.func @transform_16(%arg0: i32, %arg1: i32) -> (i32, i32, i32) {
    %c0_i32 = arith.constant 0 : i32
    %c0_i32_0 = arith.constant 0 : i32
    %c0_i32_1 = arith.constant 0 : i32
    %c0_i32_2 = arith.constant 0 : i32
    return %c0_i32, %c0_i32_0, %c0_i32_1 : i32, i32, i32
  }
  func.func @transform_17(%arg0: i32, %arg1: i32) -> (i32, i32, i32) {
    %c0_i32 = arith.constant 0 : i32
    %c0_i32_0 = arith.constant 0 : i32
    %c0_i32_1 = arith.constant 0 : i32
    %c0_i32_2 = arith.constant 0 : i32
    return %c0_i32, %c0_i32_0, %c0_i32_1 : i32, i32, i32
  }
  func.func @transform_18(%arg0: i32, %arg1: i32) -> (i32, i32, i32) {
    %c0_i32 = arith.constant 0 : i32
    %c0_i32_0 = arith.constant 0 : i32
    %c0_i32_1 = arith.constant 0 : i32
    %c0_i32_2 = arith.constant 0 : i32
    return %c0_i32, %c0_i32_0, %c0_i32_1 : i32, i32, i32
  }
  func.func @transform_19(%arg0: i32, %arg1: i32) -> (i32, i32) {
    %c0_i32 = arith.constant 0 : i32
    %c0_i32_0 = arith.constant 0 : i32
    return %arg0, %c0_i32 : i32, i32
  }
}

</mosaic_0001>

<bundles_post_ra>
// kernel: tpu_custom_call.1
= control target key start
LH: loop header
LB: loop body
LE: loop exit
PB: predicated region body
PF: predicated region fallthrough
CT: control target
= control target key end

     0   :  { %s4005_s0 = inlined_call_operand.vmem [shape: f32[16,128], index: 0, kind: input, shape index: {}]   ;;  %s4006_s1 = inlined_call_operand.vmem [shape: f32[16,1], index: 1, kind: input, shape index: {}]   ;;  %s4007_s2 = inlined_call_operand.vmem [shape: s8[2,8,8], index: 2, kind: input, shape index: {}]   ;;  %s4008_s3 = inlined_call_operand.vmem [shape: bf16[2,128,32], index: 3, kind: input, shape index: {}]   ;;  %s4009_s4 = inlined_call_operand.vmem [shape: f32[2,1,32], index: 4, kind: input, shape index: {}]   ;;  %s4010_s5 = inlined_call_operand.vmem [shape: bf16[2,128,32], index: 5, kind: input, shape index: {}]   ;;  %s4011_s6 = inlined_call_operand.vmem [shape: f32[2,1,32], index: 6, kind: input, shape index: {}]   ;;  %s4012_s7 = inlined_call_operand.vmem [shape: bf16[2,128,32], index: 7, kind: input, shape index: {}]   ;;  %s4013_s8 = inlined_call_operand.vmem [shape: f32[2,1,32], index: 8, kind: input, shape index: {}]   ;;  %s4014_s9 = inlined_call_operand.vmem [shape: bf16[2,32,128], index: 9, kind: input, shape index: {}]   ;;  %s4015_s10 = inlined_call_operand.vmem [shape: f32[2,1,128], index: 10, kind: input, shape index: {}]   ;;  %s4016_s11 = inlined_call_operand.vmem [shape: f32[2,1,128], index: 11, kind: input, shape index: {}]   ;;  %s4017_s12 = inlined_call_operand.vmem [shape: f32[2,1,128], index: 12, kind: input, shape index: {}]   ;;  %s4018_s13 = inlined_call_operand.vmem [shape: bf16[2,128,128], index: 13, kind: input, shape index: {}]   ;;  %s4019_s14 = inlined_call_operand.vmem [shape: f32[2,1,128], index: 14, kind: input, shape index: {}]   ;;  %s4020_s15 = inlined_call_operand.vmem [shape: bf16[2,128,128], index: 15, kind: input, shape index: {}]   ;;  %s4021_s16 = inlined_call_operand.vmem [shape: f32[2,1,128], index: 16, kind: input, shape index: {}]   ;;  %s4022_s17 = inlined_call_operand.vmem [shape: f32[2,1,128], index: 17, kind: input, shape index: {}]   ;;  %s4023_s18 = inlined_call_operand.vmem [shape: f32[2,1,128], index: 18, kind: input, shape index: {}]   ;;  %s4024_s19 = inlined_call_operand.hbm [shape: f32[16,128], index: 19, kind: output, shape index: {}]  }
   0x1   :  { %4027 = sst [smem:[#allocation6_spill]] %s4005_s0 }
   0x2   :  { %4028 = sst [smem:[#allocation7_spill]] %s4006_s1 }
   0x3   :  { %4029 = sst [smem:[#allocation8_spill]] %s4007_s2 }
   0x4   :  { %4030 = sst [smem:[#allocation9_spill]] %s4008_s3 }
   0x5   :  { %4031 = sst [smem:[#allocation10_spill]] %s4009_s4 }
   0x6   :  { %24 = vsyncpa [#allocation4], 0  ;;  %s3503_s0 = smov 0   ;;  %s3505_s30 = smov 0  }
   0x7   :  { %s3507_s20 = smov 0  }
   0x8 LB: > { %s2782_s21 = sadd.s32 4294967295, %s3392_s20   ;;  %s39_s1 = sadd.s32 1, %s3388_s30  ;;  %s3392_s20 = sphi %s3507_s20, %s30_s20   ;;  %s3388_s30 = sphi %s3505_s30, %s4043_s30   ;;  %s3384_s0 = sphi %s3503_s0, %s4042_s0  }
   0x9   : > { %p40_p0 = scmp.ge.s32.totalorder %s39_s1, 2  ;;  %p2787_p1 = scmp.ge.s32.totalorder %s3392_s20, 1 }
   0xa   : > { %p573_p2 = scmp.lt.s32.totalorder %s3392_s20, 3 }
   0xb   : > { %s4045_s1 = smov (%p40_p0, %s39_s1), 0 }
   0xc   : > { %p574_p3 = pnand %p2787_p1, %p573_p2 }
   0xd   : > { %p2788_p4 = scmp.ne.s32.totalorder (!%p574_p3), %s3384_s0, 0 }
   0xe   : > { %577 = sbr.rel (%p574_p3) target bundleno = 6025 (0x1789), region = 96 }
  0x15   : > { %657 = sbr.rel (%p2788_p4) target bundleno = 29 (0x1d), region = 100  ;;  %s4032_s23 = sld [smem:[#allocation6_spill]] (!%p2788_p4) }
  0x1b   : > { %v658_v0 = vld [vmem:[%s4032_s23] sm:$0xff] (!%p2788_p4)  ;;  %v659_v1 = vld [vmem:[%s4032_s23 + $0x8] sm:$0xff] (!%p2788_p4) }
  0x1c   : > { %660 = vst [vmem:[#allocation3] sm:$0xff] %v658_v0  ;;  %661 = vst [vmem:[#allocation3 + $0x8] sm:$0xff] %v659_v1 }
  0x1d PF: > { %s3532_s3 = sshll.u32 %s3384_s0, 6  ;;  %v3394_v2 = vmov 0.0   ;;  %s4033_s2 = sld [smem:[#allocation9_spill]]  ;;  %vm3395_vm0 = vmmov 0   ;;  %vm1028_vm1 = vcmask 64512   ;;  %vm1091_vm3 = vcmask 1043456  }
  0x1e   : > { %2995 = vmatprep.subr.bf16.mxu1 %v3394_v2  ;;  %s3539_s28 = scalar_lea.vmem %s4010_s5, %s3532_s3  ;;  %2975 = vmatprep.subr.bf16.mxu0 %v3394_v2  ;;  %s803_s27 = scalar_lea.vmem %s4011_s6, %s3384_s0 }
  0x1f   : > { %v3260_v3 = vld [vmem:[%s3539_s28] sm:$0xff]   ;;  %3011 = vmatprep.mubr.msk.bf16.mxu1 %vm3395_vm0, %v3394_v2  ;;  %2991 = vmatprep.mubr.msk.bf16.mxu0 %vm3395_vm0, %v3394_v2  ;;  %v3262_v5 = vld [vmem:[%s3539_s28 + $0x8] sm:$0xff]   ;;  %v3264_v7 = vld [vmem:[%s3539_s28 + $0x10] sm:$0xff]   ;;  %s4034_s4 = sld [smem:[#allocation10_spill]]  ;;  %s901_s26 = scalar_lea.vmem %s4012_s7, %s3532_s3 }
  0x20   : > { %2996 = vmatpush3.bf16.msra.mxu1 %v3260_v3  ;;  %v3266_v9 = vld [vmem:[%s3539_s28 + $0x18] sm:$0xff]   ;;  %v3268_v11 = vld [vmem:[%s3539_s28 + $0x20] sm:$0xff]   ;;  %v3270_v13 = vld [vmem:[%s3539_s28 + $0x28] sm:$0xff]   ;;  %s4035_s29 = sld [smem:[#allocation8_spill]]  ;;  %s918_s25 = scalar_lea.vmem %s4013_s8, %s3384_s0 }
  0x21   : > { %2997 = vmatprep.subr.bf16.mxu1 %v3394_v2  ;;  %v3272_v15 = vld [vmem:[%s3539_s28 + $0x30] sm:$0xff]   ;;  %v3274_v17 = vld [vmem:[%s3539_s28 + $0x38] sm:$0xff]   ;;  %v2801_v22 = vld [vmem:[%s803_s27] ss:$0 sm:$0xff]  ;;  %s2319_s27 = scalar_lea.vmem %s4017_s12, %s3384_s0  ;;  %s2613_s28 = scalar_lea.vmem %s4022_s17, %s3384_s0 }
  0x22   : > { %v3276_v40 = vld [vmem:[%s901_s26] sm:$0xff]   ;;  %v3277_v41 = vld [vmem:[%s901_s26 + $0x8] sm:$0xff]   ;;  %v3278_v42 = vld [vmem:[%s901_s26 + $0x10] sm:$0xff]   ;;  %p3969_p5 = scmp.eq.s32.totalorder %s2782_s21, 1 }
  0x23   : > { %s3546_s24 = scalar_lea.vmem %s4033_s2, %s3532_s3  ;;  %v3579_v18 = vld [vmem:[#allocation3] sm:$0xff]  ;;  %v3581_v19 = vld [vmem:[#allocation3 + $0x8] sm:$0xff]  ;;  %s3396_s2 = smov 120   ;;  %v3279_v43 = vld [vmem:[%s901_s26 + $0x18] sm:$0xff]  }
  0x24   : > { %v3261_v4 = vld [vmem:[%s3546_s24] sm:$0xff]   ;;  %v3263_v6 = vld [vmem:[%s3546_s24 + $0x8] sm:$0xff]   ;;  %2998 = vmatpush3.bf16.msra.mxu1 %v3262_v5  ;;  %v3265_v8 = vld [vmem:[%s3546_s24 + $0x10] sm:$0xff]   ;;  %v666_v21 = vpack.c.bf16 %v3581_v19, %v3579_v18 }
  0x25   : > { %2976 = vmatpush3.bf16.msra.mxu0 %v3261_v4  ;;  %2999 = vmatprep.subr.bf16.mxu1 %v3394_v2  ;;  %v3267_v10 = vld [vmem:[%s3546_s24 + $0x18] sm:$0xff]   ;;  %v3269_v12 = vld [vmem:[%s3546_s24 + $0x20] sm:$0xff]   ;;  %v3271_v14 = vld [vmem:[%s3546_s24 + $0x28] sm:$0xff]   ;;  %s686_s22 = scalar_lea.vmem %s4034_s4, %s3384_s0 }
  0x26   : > { %2977 = vmatprep.subr.bf16.mxu0 %v3394_v2  ;;  %v3273_v16 = vld [vmem:[%s3546_s24 + $0x30] sm:$0xff]   ;;  %v3275_v20 = vld [vmem:[%s3546_s24 + $0x38] sm:$0xff]   ;;  %v2791_v23 = vld [vmem:[%s686_s22] ss:$0 sm:$0xff]  ;;  %s3397_s22 = smov 112   ;;  %s3398_s24 = smov 104  }
  0x27   : > { %v3280_v44 = vld [vmem:[%s901_s26 + $0x20] sm:$0xff]   ;;  %v3281_v45 = vld [vmem:[%s901_s26 + $0x28] sm:$0xff]   ;;  %v3282_v46 = vld [vmem:[%s901_s26 + $0x30] sm:$0xff]  }
  0x28   : > { %3000 = vmatpush3.bf16.msra.mxu1 %v3264_v7  ;;  %v3283_v47 = vld [vmem:[%s901_s26 + $0x38] sm:$0xff]   ;;  %v3638_v48 = vld [vmem:[%s4035_s29] sm:$0xf]   ;;  %s2879_s26 = sshll.u32 %s3384_s0, 4 }
  0x29   : > { %2978 = vmatpush3.bf16.msra.mxu0 %v3263_v6  ;;  %3001 = vmatprep.subr.bf16.mxu1 %v3394_v2  ;;  %v1023_v49 = vunpack.c.0.s8 %v3638_v48  ;;  %v2811_v1 = vld [vmem:[%s918_s25] ss:$0 sm:$0xff]  ;;  %s3664_s29 = scalar_lea.vmem %s4014_s9, %s2879_s26  ;;  %s2305_s26 = scalar_lea.vmem %s4015_s10, %s3384_s0 }
  0x2a   : > { %2979 = vmatprep.subr.bf16.mxu0 %v3394_v2  ;;  %s3400_s25 = smov [#allocation3]  }
  0x2b   : > { %vm3641_vm2 = vcmp.ne.s32.totalorder %v1023_v49, 0 }
  0x2c   : > { %3002 = vmatpush3.bf16.msra.mxu1 %v3266_v9 }
  0x2d   : > { %2980 = vmatpush3.bf16.msra.mxu0 %v3265_v8  ;;  %3003 = vmatprep.subr.bf16.mxu1 %v3394_v2 }
  0x2e   : > { %2981 = vmatprep.subr.bf16.mxu0 %v3394_v2 }
  0x30   : > { %3004 = vmatpush3.bf16.msra.mxu1 %v3268_v11 }
  0x31   : > { %2982 = vmatpush3.bf16.msra.mxu0 %v3267_v10  ;;  %3005 = vmatprep.subr.bf16.mxu1 %v3394_v2  ;;  %v1018_v10 = vld [vmem:[%s3664_s29] sm:$0xf] }
  0x32   : > { %2983 = vmatprep.subr.bf16.mxu0 %v3394_v2 }
  0x34   : > { %3006 = vmatpush3.bf16.msra.mxu1 %v3270_v13  ;;  %v3668_v13 = vsel %vm1091_vm3, %v1018_v10, 0 }
  0x35   : > { %2984 = vmatpush3.bf16.msra.mxu0 %v3269_v12  ;;  %3007 = vmatprep.subr.bf16.mxu1 %v3394_v2 }
  0x36   : > { %2985 = vmatprep.subr.bf16.mxu0 %v3394_v2 }
  0x38   : > { %3008 = vmatpush3.bf16.msra.mxu1 %v3272_v15 }
  0x39   : > { %2986 = vmatpush3.bf16.msra.mxu0 %v3271_v14  ;;  %3009 = vmatprep.subr.bf16.mxu1 %v3394_v2 }
  0x3a   : > { %2987 = vmatprep.subr.bf16.mxu0 %v3394_v2 }
  0x3c   : > { %3010 = vmatpush3.bf16.msra.mxu1 %v3274_v17 }
  0x3d   : > { %2988 = vmatpush3.bf16.msra.mxu0 %v3273_v16  ;;  %3035 = vmatprep.subr.bf16.mxu1 %v3394_v2 }
  0x3e   : > { %2989 = vmatprep.subr.bf16.mxu0 %v3394_v2 }
  0x3f   : > { %3012 = vmatmul.mubr.bf16.vlgmr.msra.gmra.mrb[0].mxu1 %v666_v21 }
  0x40   : > { %3037 = vmatprep.mubr.msk.bf16.mxu1 %vm3395_vm0, %v3394_v2 }
  0x41   : > { %2990 = vmatpush3.bf16.msra.mxu0 %v3275_v20 }
  0x42   : > { %3015 = vmatprep.subr.bf16.mxu0 %v3394_v2 }
  0x44   : > { %2992 = vmatmul.mubr.bf16.vlgmr.msra.gmra.mrb[0].mxu0 %v666_v21 }
  0x45   : > { %3031 = vmatprep.mubr.msk.bf16.mxu0 %vm3395_vm0, %v3394_v2  ;;  %3016 = vmatpush3.bf16.msra.mxu0 %v3276_v40 }
  0x46   : > { %3017 = vmatprep.subr.bf16.mxu0 %v3394_v2 }
  0x49   : > { %3018 = vmatpush3.bf16.msra.mxu0 %v3277_v41 }
  0x4a   : > { %3019 = vmatprep.subr.bf16.mxu0 %v3394_v2 }
  0x4d   : > { %3020 = vmatpush3.bf16.msra.mxu0 %v3278_v42 }
  0x4e   : > { %3021 = vmatprep.subr.bf16.mxu0 %v3394_v2 }
  0x51   : > { %3022 = vmatpush3.bf16.msra.mxu0 %v3279_v43 }
  0x52   : > { %3023 = vmatprep.subr.bf16.mxu0 %v3394_v2 }
  0x55   : > { %3024 = vmatpush3.bf16.msra.mxu0 %v3280_v44 }
  0x56   : > { %3025 = vmatprep.subr.bf16.mxu0 %v3394_v2 }
  0x59   : > { %3026 = vmatpush3.bf16.msra.mxu0 %v3281_v45  ;;  %v1019_v45 = vld [vmem:[%s3664_s29 + $0x4] sm:$0xf] }
  0x5a   : > { %3027 = vmatprep.subr.bf16.mxu0 %v3394_v2 }
  0x5d   : > { %3028 = vmatpush3.bf16.msra.mxu0 %v3282_v46  ;;  %v3701_v46 = vsel %vm1091_vm3, %v1019_v45, 0 }
  0x5e   : > { %3029 = vmatprep.subr.bf16.mxu0 %v3394_v2 }
  0x61   : > { %3030 = vmatpush3.bf16.msra.mxu0 %v3283_v47 }
  0x62   : > { %3059 = vmatprep.subr.bf16.mxu0 %v3394_v2 }
  0x64   : > { %3032 = vmatmul.mubr.bf16.vlgmr.msra.gmra.mrb[4].mxu0 %v666_v21 }
  0x65   : > { %3061 = vmatprep.mubr.msk.bf16.mxu0 %vm3395_vm0, %v3394_v2 }
 0x112   : > { %v893_v24 = vpop.f32.mrb[0].mxu1 }
 0x113   : > { %v894_v25 = vadd.f32 %v2801_v22, %v893_v24  ;;  %v3013_v26 = vpop.f32.mrb[1].mxu1 }
 0x114   : > { %v896_v28 = vpop.f32.mrb[2].mxu1 }
 0x115   : > { %v3602_v31 = vpack.c.bf16 %v894_v25, %v894_v25  ;;  %v3604_v32 = vadd.f32 %v2801_v22, %v896_v28  ;;  %v3014_v33 = vpop.f32.mrb[3].mxu1 }
 0x117   : > { %v776_v27 = vpop.f32.mrb[0].mxu0  ;;  %1187 = vrot.lane.b32.xlu1 %v3602_v31, %s3396_s2  ;;  %v1033_v38 = vsel %vm1028_vm1, %v3602_v31, 0 }
 0x118   : > { %v777_v29 = vadd.f32 %v2791_v23, %v776_v27  ;;  %v2993_v30 = vpop.f32.mrb[1].mxu0  ;;  %3036 = vmatpush3.bf16.xpose.msra.mxu1 %v1033_v38 }
 0x119   : > { %v779_v34 = vpop.f32.mrb[2].mxu0  ;;  %3041 = vmatprep.subr.bf16.mxu1 %v3394_v2 }
 0x11a   : > { %v783_v35 = vmul.f32 0.35355338, %v777_v29  ;;  %v3606_v36 = vadd.f32 %v2791_v23, %v779_v34  ;;  %v2994_v37 = vpop.f32.mrb[3].mxu0 }
 0x11c   : > { %v3612_v39 = vpack.c.bf16 %v783_v35, %v783_v35 }
 0x11e   : > { %1184 = vrot.lane.b32.xlu1 %v3612_v39, %s3396_s2 }
 0x11f   : > { %3038 = vmatmul.mubr.msk.bf16.vlgmr.msra.gmra.mrb[4].mxu1 %vm1028_vm1, %v3612_v39 }
 0x120   : > { %3043 = vmatprep.mubr.msk.bf16.mxu1 %vm3395_vm0, %v3394_v2 }
 0x137   : > { %v1008_v62 = vpop.f32.mrb[4].mxu0 }
 0x138   : > { %v3033_v63 = vpop.f32.mrb[5].mxu0  ;;  %v1009_v4 = vadd.f32 %v2811_v1, %v1008_v62 }
 0x139   : > { %v1011_v0 = vpop.f32.mrb[6].mxu0 }
 0x13a   : > { %v3034_v3 = vpop.f32.mrb[7].mxu0  ;;  %v3653_v5 = vadd.f32 %v2811_v1, %v1011_v0  ;;  %v3655_v6 = vpack.c.bf16 %v1009_v4, %v1009_v4 }
 0x13c   : > { %v1093_v7 = vsel %vm1091_vm3, %v3655_v6, 0 }
 0x13d   : > { %3042 = vmatpush3.bf16.msra.mxu1 %v1093_v7 }
 0x13e   : > { %3047 = vmatprep.subr.bf16.mxu1 %v3394_v2 }
 0x189   : > { %v1188_v14 = vpop.permute.xlu1 %1187 }
 0x18a   : > { %v1193_v21 = vsel %vm1028_vm1, %v1188_v14, 0 }
 0x190   : > { %v1185_v23 = vpop.permute.xlu1 %1184 }
 0x1f2   : > { %v1069_v51 = vpop.f32.mrb[4].mxu1 }
 0x1f3   : > { %v1075_v52 = vsel %vm3641_vm2, -1e+30, %v1069_v51  ;;  %v3039_v53 = vpop.f32.mrb[5].mxu1 }
 0x1f4   : > { %v1072_v54 = vpop.f32.mrb[6].mxu1  ;;  %v1076_v55 = vsel %vm1028_vm1, %v1075_v52, -inf }
 0x1f5   : > { %1077 = vmax.xlane.f32.xlu0 %v1076_v55  ;;  %v3040_v56 = vpop.f32.mrb[7].mxu1 }
 0x282   : > { %v1078_v57 = vpop.xlane.xlu0 %1077 }
 0x283   : > { %v1079_v58 = vsub.f32 %v1075_v52, %v1078_v57 }
 0x285   : > { %v1080_v59 = vmul.f32 1.442695, %v1079_v58 }
 0x287   : > { %3300 = vpow2.f32 %v1080_v59 }
 0x291   : > { %v3301_v60 = vpop.eup %3300 }
 0x292   : > { %v1082_v61 = vsel %vm1028_vm1, %v3301_v60, 0.0 }
 0x293   : > { %1083 = vadd.xlane.f32.xlu0 %v1082_v61 }
 0x320   : > { %v1084_v8 = vpop.xlane.xlu0 %1083 }
 0x321   : > { %3302 = vrcp.f32 %v1084_v8 }
 0x32b   : > { %v3303_v9 = vpop.eup %3302 }
 0x32c   : > { %v1086_v11 = vmul.f32 %v3303_v9, %v3301_v60 }
 0x32e   : > { %v1087_v12 = vpack.c.bf16 %v1086_v11, %v1086_v11 }
 0x330   : > { %3044 = vmatmul.mubr.msk.bf16.vlgmr.msra.gmra.mrb[8].mxu1 %vm1028_vm1, %v1087_v12 }
 0x331   : > { %3048 = vmatpush3.bf16.msra.mxu1 %v3668_v13  ;;  %3049 = vmatprep.mubr.msk.bf16.mxu1 %vm3395_vm0, %v3394_v2 }
 0x332   : > { %3053 = vmatprep.subr.bf16.mxu1 %v3394_v2 }
 0x403   : > { %v1129_v15 = vpop.f32.mrb[8].mxu1 }
 0x404   : > { %v1135_v16 = vpack.c.bf16 %v1129_v15, %v1129_v15  ;;  %v3045_v17 = vpop.f32.mrb[9].mxu1 }
 0x405   : > { %v1132_v20 = vpop.f32.mrb[10].mxu1 }
 0x406   : > { %v3046_v22 = vpop.f32.mrb[11].mxu1  ;;  %3050 = vmatmul.mubr.msk.bf16.vlgmr.msra.gmra.mrb[12].mxu1 %vm1028_vm1, %v1135_v16 }
 0x407   : > { %3054 = vmatpush3.bf16.xpose.msra.mxu1 %v1193_v21  ;;  %3055 = vmatprep.mubr.msk.bf16.mxu1 %vm3395_vm0, %v3394_v2 }
 0x408   : > { %3065 = vmatprep.subr.bf16.mxu1 %v3394_v2 }
 0x40e   : > { %3056 = vmatmul.mubr.msk.bf16.vlgmr.msra.gmra.mrb[16].mxu1 %vm1028_vm1, %v1185_v23 }
 0x40f   : > { %3067 = vmatprep.mubr.msk.bf16.mxu1 %vm3395_vm0, %v3394_v2  ;;  %3066 = vmatpush3.bf16.msra.mxu1 %v3701_v46 }
 0x410   : > { %3077 = vmatprep.subr.bf16.mxu1 %v3394_v2 }
 0x4d9   : > { %v3683_v24 = vpop.f32.mrb[12].mxu1 }
 0x4da   : > { %v3051_v25 = vpop.f32.mrb[13].mxu1 }
 0x4db   : > { %v1179_v26 = vpop.f32.mrb[14].mxu1 }
 0x4dc   : > { %v3052_v27 = vpop.f32.mrb[15].mxu1 }
 0x4e1   : > { %v1229_v28 = vpop.f32.mrb[16].mxu1 }
 0x4e2   : > { %v1235_v29 = vsel %vm3641_vm2, -1e+30, %v1229_v28  ;;  %v3057_v30 = vpop.f32.mrb[17].mxu1 }
 0x4e3   : > { %v1232_v33 = vpop.f32.mrb[18].mxu1  ;;  %v1236_v34 = vsel %vm1028_vm1, %v1235_v29, -inf }
 0x4e4   : > { %1237 = vmax.xlane.f32.xlu0 %v1236_v34  ;;  %v3058_v35 = vpop.f32.mrb[19].mxu1 }
 0x4fa   : > { %1249 = vrot.lane.b32.xlu0 %v3655_v6, %s3396_s2 }
 0x4fe   : > { %1349 = vrot.lane.b32.xlu0 %v3602_v31, %s3397_s22 }
 0x502   : > { %1347 = vrot.lane.b32.xlu0 %v3612_v39, %s3397_s22 }
 0x571   : > { %v1238_v37 = vpop.xlane.xlu0 %1237 }
 0x572   : > { %v1239_v38 = vsub.f32 %v1235_v29, %v1238_v37 }
 0x574   : > { %v1240_v40 = vmul.f32 1.442695, %v1239_v38 }
 0x575   : > { %v1250_v41 = vpop.permute.xlu0 %1249 }
 0x576   : > { %3304 = vpow2.f32 %v1240_v40  ;;  %v1255_v42 = vsel %vm1091_vm3, %v1250_v41, 0 }
 0x577   : > { %3060 = vmatpush3.bf16.msra.mxu0 %v1255_v42 }
 0x578   : > { %3071 = vmatprep.subr.bf16.mxu0 %v3394_v2 }
 0x579   : > { %v1350_v52 = vpop.permute.xlu0 %1349 }
 0x57a   : > { %v1355_v54 = vsel %vm1028_vm1, %v1350_v52, 0  ;;  %v1021_v52 = vld [vmem:[%s3664_s29 + $0xc] sm:$0xf] }
 0x57d   : > { %v1348_v55 = vpop.permute.xlu0 %1347 }
 0x580   : > { %v3305_v43 = vpop.eup %3304 }
 0x581   : > { %v1242_v44 = vsel %vm1028_vm1, %v3305_v43, 0.0 }
 0x582   : > { %1243 = vadd.xlane.f32.xlu1 %v1242_v44 }
 0x593   : > { %1410 = vrot.lane.b32.xlu1 %v3655_v6, %s3397_s22 }
 0x60f   : > { %v1244_v47 = vpop.xlane.xlu1 %1243 }
 0x610   : > { %3306 = vrcp.f32 %v1244_v47 }
 0x613   : > { %v1411_v56 = vpop.permute.xlu1 %1410 }
 0x614   : > { %v1416_v61 = vsel %vm1091_vm3, %v1411_v56, 0 }
 0x61a   : > { %v3307_v49 = vpop.eup %3306 }
 0x61b   : > { %v1246_v51 = vmul.f32 %v3307_v49, %v3305_v43 }
 0x61d   : > { %v1247_v53 = vpack.c.bf16 %v1246_v51, %v1246_v51 }
 0x61f   : > { %3062 = vmatmul.mubr.msk.bf16.vlgmr.msra.gmra.mrb[8].mxu0 %vm1028_vm1, %v1247_v53  ;;  %v3754_v53 = vsel %vm1091_vm3, %v1021_v52, 0 }
 0x620   : > { %3072 = vmatpush3.bf16.xpose.msra.mxu0 %v1355_v54  ;;  %3073 = vmatprep.mubr.msk.bf16.mxu0 %vm3395_vm0, %v3394_v2 }
 0x621   : > { %3083 = vmatprep.subr.bf16.mxu0 %v3394_v2 }
 0x627   : > { %3074 = vmatmul.mubr.msk.bf16.vlgmr.msra.gmra.mrb[12].mxu0 %vm1028_vm1, %v1348_v55 }
 0x628   : > { %3085 = vmatprep.mubr.msk.bf16.mxu0 %vm3395_vm0, %v3394_v2 }
 0x6f2   : > { %v1291_v57 = vpop.f32.mrb[8].mxu0 }
 0x6f3   : > { %v1297_v58 = vpack.c.bf16 %v1291_v57, %v1291_v57  ;;  %v3063_v59 = vpop.f32.mrb[9].mxu0 }
 0x6f4   : > { %v1294_v60 = vpop.f32.mrb[10].mxu0 }
 0x6f5   : > { %v3064_v62 = vpop.f32.mrb[11].mxu0  ;;  %3068 = vmatmul.mubr.msk.bf16.vlgmr.msra.gmra.mrb[20].mxu1 %vm1028_vm1, %v1297_v58  ;;  %v3760_v60 = vpack.c.bf16 %v3604_v32, %v3604_v32  ;;  %v3779_v32 = vpack.c.bf16 %v3653_v5, %v3653_v5  ;;  %v2847_v5 = vld [vmem:[%s2305_s26] ss:$0 sm:$0xff] }
 0x6f6   : > { %3078 = vmatpush3.bf16.msra.mxu1 %v1416_v61  ;;  %3079 = vmatprep.mubr.msk.bf16.mxu1 %vm3395_vm0, %v3394_v2 }
 0x6f7   : > { %3089 = vmatprep.subr.bf16.mxu1 %v3394_v2 }
 0x6fa   : > { %v1391_v63 = vpop.f32.mrb[12].mxu0 }
 0x6fb   : > { %v1397_v0 = vsel %vm3641_vm2, -1e+30, %v1391_v63  ;;  %v3075_v1 = vpop.f32.mrb[13].mxu0  ;;  %v1680_v63 = vsel %vm1028_vm1, %v3760_v60, 0 }
 0x6fc   : > { %v1394_v3 = vpop.f32.mrb[14].mxu0  ;;  %v1398_v4 = vsel %vm1028_vm1, %v1397_v0, -inf }
 0x6fd   : > { %1399 = vmax.xlane.f32.xlu0 %v1398_v4  ;;  %v3076_v7 = vpop.f32.mrb[15].mxu0 }
 0x78a   : > { %v1400_v8 = vpop.xlane.xlu0 %1399 }
 0x78b   : > { %v1401_v9 = vsub.f32 %v1397_v0, %v1400_v8  ;;  %v784_v0 = vmul.f32 0.35355338, %v3606_v36  ;;  %v1671_v8 = vunpack.c.1.s8 %v3638_v48 }
 0x78d   : > { %v1402_v10 = vmul.f32 1.442695, %v1401_v9  ;;  %v3769_v1 = vpack.c.bf16 %v784_v0, %v784_v0  ;;  %vm3788_vm4 = vcmp.ne.s32.totalorder %v1671_v8, 0 }
 0x78f   : > { %3308 = vpow2.f32 %v1402_v10 }
 0x799   : > { %v3309_v11 = vpop.eup %3308 }
 0x79a   : > { %v1404_v12 = vsel %vm1028_vm1, %v3309_v11, 0.0 }
 0x79b   : > { %1405 = vadd.xlane.f32.xlu1 %v1404_v12 }
 0x7ac   : > { %1510 = vrot.lane.b32.xlu1 %v3602_v31, %s3398_s24 }
 0x7b0   : > { %1508 = vrot.lane.b32.xlu1 %v3612_v39, %s3398_s24  ;;  %v1020_v39 = vld [vmem:[%s3664_s29 + $0x8] sm:$0xf]  ;;  %s4040_s29 = sld [smem:[#allocation7_spill]] }
 0x7c8   : > { %v1338_v14 = vpop.f32.mrb[20].mxu1 }
 0x7c9   : > { %v1345_v15 = vadd.f32 %v1338_v14, %v3683_v24  ;;  %v3069_v16 = vpop.f32.mrb[21].mxu1  ;;  %v3737_v24 = vsel %vm1091_vm3, %v1020_v39, 0 }
 0x7ca   : > { %v1341_v17 = vpop.f32.mrb[22].mxu1  ;;  %3084 = vmatpush3.bf16.msra.mxu0 %v3737_v24 }
 0x7cb   : > { %v3070_v20 = vpop.f32.mrb[23].mxu1  ;;  %3095 = vmatprep.subr.bf16.mxu0 %v3394_v2 }
 0x828   : > { %v1406_v21 = vpop.xlane.xlu1 %1405 }
 0x829   : > { %3310 = vrcp.f32 %v1406_v21 }
 0x82c   : > { %v1511_v25 = vpop.permute.xlu1 %1510 }
 0x82d   : > { %v1516_v27 = vsel %vm1028_vm1, %v1511_v25, 0 }
 0x830   : > { %v1509_v31 = vpop.permute.xlu1 %1508 }
 0x833   : > { %v3311_v22 = vpop.eup %3310 }
 0x834   : > { %v1408_v23 = vmul.f32 %v3311_v22, %v3309_v11 }
 0x836   : > { %v1409_v26 = vpack.c.bf16 %v1408_v23, %v1408_v23 }
 0x838   : > { %3080 = vmatmul.mubr.msk.bf16.vlgmr.msra.gmra.mrb[24].mxu1 %vm1028_vm1, %v1409_v26 }
 0x839   : > { %3090 = vmatpush3.bf16.xpose.msra.mxu1 %v1516_v27  ;;  %3091 = vmatprep.mubr.msk.bf16.mxu1 %vm3395_vm0, %v3394_v2 }
 0x83a   : > { %3101 = vmatprep.subr.bf16.mxu1 %v3394_v2 }
 0x840   : > { %3092 = vmatmul.mubr.msk.bf16.vlgmr.msra.gmra.mrb[28].mxu1 %vm1028_vm1, %v1509_v31 }
 0x841   : > { %3103 = vmatprep.mubr.msk.bf16.mxu1 %vm3395_vm0, %v3394_v2  ;;  %3102 = vmatpush3.bf16.msra.mxu1 %v3754_v53 }
 0x842   : > { %3113 = vmatprep.subr.bf16.mxu1 %v3394_v2 }
 0x90b   : > { %v1452_v28 = vpop.f32.mrb[24].mxu1 }
 0x90c   : > { %v1458_v29 = vpack.c.bf16 %v1452_v28, %v1452_v28  ;;  %v3081_v30 = vpop.f32.mrb[25].mxu1 }
 0x90d   : > { %v1455_v33 = vpop.f32.mrb[26].mxu1 }
 0x90e   : > { %v3082_v34 = vpop.f32.mrb[27].mxu1  ;;  %3086 = vmatmul.mubr.msk.bf16.vlgmr.msra.gmra.mrb[16].mxu0 %vm1028_vm1, %v1458_v29 }
 0x90f   : > { %3097 = vmatprep.mubr.msk.bf16.mxu0 %vm3395_vm0, %v3394_v2 }
 0x913   : > { %v1552_v35 = vpop.f32.mrb[28].mxu1 }
 0x914   : > { %v1558_v37 = vsel %vm3641_vm2, -1e+30, %v1552_v35  ;;  %v3093_v38 = vpop.f32.mrb[29].mxu1 }
 0x915   : > { %v1555_v40 = vpop.f32.mrb[30].mxu1  ;;  %v1559_v41 = vsel %vm1028_vm1, %v1558_v37, -inf }
 0x916   : > { %1560 = vmax.xlane.f32.xlu0 %v1559_v41  ;;  %v3094_v42 = vpop.f32.mrb[31].mxu1 }
 0x92c   : > { %1571 = vrot.lane.b32.xlu0 %v3655_v6, %s3398_s24 }
 0x9a3   : > { %v1561_v43 = vpop.xlane.xlu0 %1560 }
 0x9a4   : > { %v1562_v44 = vsub.f32 %v1558_v37, %v1561_v43 }
 0x9a6   : > { %v1563_v45 = vmul.f32 1.442695, %v1562_v44 }
 0x9a7   : > { %v1572_v47 = vpop.permute.xlu0 %1571 }
 0x9a8   : > { %3312 = vpow2.f32 %v1563_v45  ;;  %v1577_v49 = vsel %vm1091_vm3, %v1572_v47, 0 }
 0x9a9   : > { %3096 = vmatpush3.bf16.msra.mxu0 %v1577_v49 }
 0x9aa   : > { %3107 = vmatprep.subr.bf16.mxu0 %v3394_v2 }
 0x9b2   : > { %v3313_v50 = vpop.eup %3312 }
 0x9b3   : > { %v1565_v51 = vsel %vm1028_vm1, %v3313_v50, 0.0 }
 0x9b4   : > { %1566 = vadd.xlane.f32.xlu1 %v1565_v51 }
 0x9e1   : > { %v1499_v6 = vpop.f32.mrb[16].mxu0 }
 0x9e2   : > { %v1506_v54 = vadd.f32 %v1499_v6, %v1345_v15  ;;  %v3087_v55 = vpop.f32.mrb[17].mxu0 }
 0x9e3   : > { %v1502_v56 = vpop.f32.mrb[18].mxu0 }
 0x9e4   : > { %v3088_v57 = vpop.f32.mrb[19].mxu0 }
 0xa41   : > { %v1567_v58 = vpop.xlane.xlu1 %1566 }
 0xa42   : > { %3314 = vrcp.f32 %v1567_v58 }
 0xa4c   : > { %v3315_v59 = vpop.eup %3314 }
 0xa4d   : > { %v1569_v61 = vmul.f32 %v3315_v59, %v3313_v50 }
 0xa4f   : > { %v1570_v62 = vpack.c.bf16 %v1569_v61, %v1569_v61 }
 0xa51   : > { %3098 = vmatmul.mubr.msk.bf16.vlgmr.msra.gmra.mrb[20].mxu0 %vm1028_vm1, %v1570_v62 }
 0xa52   : > { %3108 = vmatpush3.bf16.xpose.msra.mxu0 %v1680_v63  ;;  %3109 = vmatprep.mubr.msk.bf16.mxu0 %vm3395_vm0, %v3394_v2 }
 0xa53   : > { %3119 = vmatprep.subr.bf16.mxu0 %v3394_v2 }
 0xa59   : > { %3110 = vmatmul.mubr.msk.bf16.vlgmr.msra.gmra.mrb[24].mxu0 %vm1028_vm1, %v3769_v1 }
 0xa5a   : > { %3120 = vmatpush3.bf16.msra.mxu0 %v3668_v13  ;;  %3121 = vmatprep.mubr.msk.bf16.mxu0 %vm3395_vm0, %v3394_v2  ;;  %v1739_v13 = vsel %vm1091_vm3, %v3779_v32, 0 }
 0xa5b   : > { %3131 = vmatprep.subr.bf16.mxu0 %v3394_v2 }
 0xb24   : > { %v1613_v3 = vpop.f32.mrb[20].mxu0 }
 0xb25   : > { %v1619_v36 = vpack.c.bf16 %v1613_v3, %v1613_v3  ;;  %v3099_v4 = vpop.f32.mrb[21].mxu0 }
 0xb26   : > { %v1616_v7 = vpop.f32.mrb[22].mxu0 }
 0xb27   : > { %v3100_v9 = vpop.f32.mrb[23].mxu0  ;;  %3104 = vmatmul.mubr.msk.bf16.vlgmr.msra.gmra.mrb[32].mxu1 %vm1028_vm1, %v1619_v36 }
 0xb28   : > { %3114 = vmatpush3.bf16.msra.mxu1 %v1739_v13  ;;  %3115 = vmatprep.mubr.msk.bf16.mxu1 %vm3395_vm0, %v3394_v2 }
 0xb29   : > { %3125 = vmatprep.subr.bf16.mxu1 %v3394_v2 }
 0xb2c   : > { %v1716_v10 = vpop.f32.mrb[24].mxu0 }
 0xb2d   : > { %v1722_v48 = vsel %vm3788_vm4, -1e+30, %v1716_v10  ;;  %v3111_v11 = vpop.f32.mrb[25].mxu0 }
 0xb2e   : > { %v1719_v12 = vpop.f32.mrb[26].mxu0  ;;  %v1723_v14 = vsel %vm1028_vm1, %v1722_v48, -inf }
 0xb2f   : > { %1724 = vmax.xlane.f32.xlu0 %v1723_v14  ;;  %v3112_v15 = vpop.f32.mrb[27].mxu0 }
 0xb45   : > { %1827 = vrot.lane.b32.xlu0 %v3769_v1, %s3396_s2 }
 0xbbc   : > { %v1725_v16 = vpop.xlane.xlu0 %1724 }
 0xbbd   : > { %v1726_v17 = vsub.f32 %v1722_v48, %v1725_v16 }
 0xbbf   : > { %v1727_v20 = vmul.f32 1.442695, %v1726_v17 }
 0xbc0   : > { %v1828_v35 = vpop.permute.xlu0 %1827 }
 0xbc1   : > { %3316 = vpow2.f32 %v1727_v20 }
 0xbcb   : > { %v3317_v21 = vpop.eup %3316 }
 0xbcc   : > { %v1729_v22 = vsel %vm1028_vm1, %v3317_v21, 0.0 }
 0xbcd   : > { %1730 = vadd.xlane.f32.xlu1 %v1729_v22 }
 0xbde   : > { %1830 = vrot.lane.b32.xlu1 %v3760_v60, %s3396_s2 }
 0xbfa   : > { %v1660_v23 = vpop.f32.mrb[32].mxu1 }
 0xbfb   : > { %v3800_v25 = vadd.f32 %v1660_v23, %v1506_v54  ;;  %v3105_v26 = vpop.f32.mrb[33].mxu1 }
 0xbfc   : > { %v1663_v27 = vpop.f32.mrb[34].mxu1 }
 0xbfd   : > { %v3106_v31 = vpop.f32.mrb[35].mxu1 }
 0xc5a   : > { %v1731_v39 = vpop.xlane.xlu1 %1730 }
 0xc5b   : > { %3318 = vrcp.f32 %v1731_v39 }
 0xc5e   : > { %v1831_v30 = vpop.permute.xlu1 %1830 }
 0xc5f   : > { %v1836_v34 = vsel %vm1028_vm1, %v1831_v30, 0 }
 0xc65   : > { %v3319_v28 = vpop.eup %3318 }
 0xc66   : > { %v1733_v29 = vmul.f32 %v3319_v28, %v3317_v21 }
 0xc68   : > { %v1734_v33 = vpack.c.bf16 %v1733_v29, %v1733_v29 }
 0xc6a   : > { %3116 = vmatmul.mubr.msk.bf16.vlgmr.msra.gmra.mrb[36].mxu1 %vm1028_vm1, %v1734_v33 }
 0xc6b   : > { %3126 = vmatpush3.bf16.xpose.msra.mxu1 %v1836_v34  ;;  %3127 = vmatprep.mubr.msk.bf16.mxu1 %vm3395_vm0, %v3394_v2 }
 0xc6c   : > { %3137 = vmatprep.subr.bf16.mxu1 %v3394_v2 }
 0xc72   : > { %3128 = vmatmul.mubr.msk.bf16.vlgmr.msra.gmra.mrb[40].mxu1 %vm1028_vm1, %v1828_v35 }
 0xc73   : > { %3138 = vmatpush3.bf16.msra.mxu1 %v3701_v46  ;;  %3139 = vmatprep.mubr.msk.bf16.mxu1 %vm3395_vm0, %v3394_v2 }
 0xc74   : > { %3149 = vmatprep.subr.bf16.mxu1 %v3394_v2 }
 0xd3d   : > { %v1775_v37 = vpop.f32.mrb[36].mxu1 }
 0xd3e   : > { %v1781_v38 = vpack.c.bf16 %v1775_v37, %v1775_v37  ;;  %v3117_v40 = vpop.f32.mrb[37].mxu1 }
 0xd3f   : > { %v1778_v41 = vpop.f32.mrb[38].mxu1 }
 0xd40   : > { %v3118_v42 = vpop.f32.mrb[39].mxu1  ;;  %3122 = vmatmul.mubr.msk.bf16.vlgmr.msra.gmra.mrb[28].mxu0 %vm1028_vm1, %v1781_v38 }
 0xd41   : > { %3133 = vmatprep.mubr.msk.bf16.mxu0 %vm3395_vm0, %v3394_v2 }
 0xd45   : > { %v1872_v43 = vpop.f32.mrb[40].mxu1 }
 0xd46   : > { %v1878_v44 = vsel %vm3788_vm4, -1e+30, %v1872_v43  ;;  %v3129_v46 = vpop.f32.mrb[41].mxu1 }
 0xd47   : > { %v1875_v45 = vpop.f32.mrb[42].mxu1  ;;  %v1879_v47 = vsel %vm1028_vm1, %v1878_v44, -inf }
 0xd48   : > { %1880 = vmax.xlane.f32.xlu1 %v1879_v47  ;;  %v3130_v49 = vpop.f32.mrb[43].mxu1 }
 0xd59   : > { %1892 = vrot.lane.b32.xlu1 %v3779_v32, %s3396_s2  ;;  %s2379_s2 = scalar_lea.vmem %s4018_s13, %s3532_s3 }
 0xd5d   : > { %1987 = vrot.lane.b32.xlu1 %v3769_v1, %s3397_s22 }
 0xdd5   : > { %v1881_v50 = vpop.xlane.xlu1 %1880 }
 0xdd6   : > { %v1882_v51 = vsub.f32 %v1878_v44, %v1881_v50 }
 0xdd8   : > { %v1883_v52 = vmul.f32 1.442695, %v1882_v51 }
 0xdd9   : > { %v1893_v6 = vpop.permute.xlu1 %1892 }
 0xdda   : > { %3320 = vpow2.f32 %v1883_v52  ;;  %v1898_v54 = vsel %vm1091_vm3, %v1893_v6, 0 }
 0xddb   : > { %3132 = vmatpush3.bf16.msra.mxu0 %v1898_v54 }
 0xddc   : > { %3143 = vmatprep.subr.bf16.mxu0 %v3394_v2 }
 0xddd   : > { %v1988_v7 = vpop.permute.xlu1 %1987 }
 0xde4   : > { %v3321_v55 = vpop.eup %3320 }
 0xde5   : > { %v1885_v56 = vsel %vm1028_vm1, %v3321_v55, 0.0 }
 0xde6   : > { %1886 = vadd.xlane.f32.xlu0 %v1885_v56 }
 0xdfc   : > { %1989 = vrot.lane.b32.xlu0 %v3760_v60, %s3397_s22 }
 0xe13   : > { %v1819_v57 = vpop.f32.mrb[28].mxu0 }
 0xe14   : > { %v3123_v58 = vpop.f32.mrb[29].mxu0 }
 0xe15   : > { %v1822_v59 = vpop.f32.mrb[30].mxu0 }
 0xe16   : > { %v3124_v61 = vpop.f32.mrb[31].mxu0 }
 0xe73   : > { %v1887_v62 = vpop.xlane.xlu0 %1886 }
 0xe74   : > { %3322 = vrcp.f32 %v1887_v62 }
 0xe77   : > { %v1990_v3 = vpop.permute.xlu0 %1989 }
 0xe78   : > { %v1995_v4 = vsel %vm1028_vm1, %v1990_v3, 0 }
 0xe7e   : > { %v3323_v63 = vpop.eup %3322 }
 0xe7f   : > { %v1889_v0 = vmul.f32 %v3323_v63, %v3321_v55 }
 0xe81   : > { %v1890_v36 = vpack.c.bf16 %v1889_v0, %v1889_v0 }
 0xe83   : > { %3134 = vmatmul.mubr.msk.bf16.vlgmr.msra.gmra.mrb[32].mxu0 %vm1028_vm1, %v1890_v36 }
 0xe84   : > { %3144 = vmatpush3.bf16.xpose.msra.mxu0 %v1995_v4  ;;  %3145 = vmatprep.mubr.msk.bf16.mxu0 %vm3395_vm0, %v3394_v2 }
 0xe85   : > { %3155 = vmatprep.subr.bf16.mxu0 %v3394_v2 }
 0xe8b   : > { %3146 = vmatmul.mubr.msk.bf16.vlgmr.msra.gmra.mrb[36].mxu0 %vm1028_vm1, %v1988_v7 }
 0xe8c   : > { %3156 = vmatpush3.bf16.msra.mxu0 %v3737_v24  ;;  %3157 = vmatprep.mubr.msk.bf16.mxu0 %vm3395_vm0, %v3394_v2 }
 0xe8d   : > { %3167 = vmatprep.subr.bf16.mxu0 %v3394_v2 }
 0xf56   : > { %v1934_v8 = vpop.f32.mrb[32].mxu0 }
 0xf57   : > { %v1940_v9 = vpack.c.bf16 %v1934_v8, %v1934_v8  ;;  %v3135_v13 = vpop.f32.mrb[33].mxu0 }
 0xf58   : > { %v1937_v10 = vpop.f32.mrb[34].mxu0 }
 0xf59   : > { %v3136_v48 = vpop.f32.mrb[35].mxu0  ;;  %3140 = vmatmul.mubr.msk.bf16.vlgmr.msra.gmra.mrb[44].mxu1 %vm1028_vm1, %v1940_v9  ;;  %v3399_v10 = vmov 0  }
 0xf5a   : > { %3151 = vmatprep.mubr.msk.bf16.mxu1 %vm3395_vm0, %v3394_v2  ;;  %3259 = vset.pattern.permute.xlu1 %v3399_v10 }
 0xf5b   : > { %3258 = vset.pattern.permute.xlu0 %v3399_v10 }
 0xf5e   : > { %v2031_v11 = vpop.f32.mrb[36].mxu0 }
 0xf5f   : > { %v2037_v12 = vsel %vm3788_vm4, -1e+30, %v2031_v11  ;;  %v3147_v24 = vpop.f32.mrb[37].mxu0 }
 0xf60   : > { %v2034_v14 = vpop.f32.mrb[38].mxu0  ;;  %v2038_v15 = vsel %vm1028_vm1, %v2037_v12, -inf }
 0xf61   : > { %2039 = vmax.xlane.f32.xlu1 %v2038_v15  ;;  %v3148_v16 = vpop.f32.mrb[39].mxu0 }
 0xf72   : > { %2050 = vrot.lane.b32.xlu1 %v3779_v32, %s3397_s22  ;;  %s3917_s22 = scalar_lea.vmem %s4020_s15, %s3532_s3 }
 0xf76   : > { %2145 = vrot.lane.b32.xlu1 %v3769_v1, %s3398_s24 }
 0xfee   : > { %v2040_v17 = vpop.xlane.xlu1 %2039 }
 0xfef   : > { %v2041_v20 = vsub.f32 %v2037_v12, %v2040_v17 }
 0xff1   : > { %v2042_v21 = vmul.f32 1.442695, %v2041_v20 }
 0xff2   : > { %v2051_v22 = vpop.permute.xlu1 %2050 }
 0xff3   : > { %3324 = vpow2.f32 %v2042_v21  ;;  %v2056_v23 = vsel %vm1091_vm3, %v2051_v22, 0  ;;  %v665_v21 = vld [vmem:[%s4040_s29 + $0x8] sm:$0xff] }
 0xff4   : > { %3150 = vmatpush3.bf16.msra.mxu1 %v2056_v23  ;;  %v3285_v22 = vld [vmem:[%s2379_s2 + $0x8] sm:$0xff]   ;;  %v664_v23 = vld [vmem:[%s4040_s29] sm:$0xff] }
 0xff5   : > { %3161 = vmatprep.subr.bf16.mxu1 %v3394_v2 }
 0xffd   : > { %v3325_v26 = vpop.eup %3324 }
 0xffe   : > { %v2044_v27 = vsel %vm1028_vm1, %v3325_v26, 0.0 }
 0xfff   : > { %2045 = vadd.xlane.f32.xlu0 %v2044_v27  ;;  %v3287_v27 = vld [vmem:[%s2379_s2 + $0x18] sm:$0xff]  }
0x1015   : > { %2147 = vrot.lane.b32.xlu0 %v3760_v60, %s3398_s24  ;;  %v2146_v60 = vpop.permute.xlu1 %2145 }
0x102c   : > { %v1978_v31 = vpop.f32.mrb[44].mxu1 }
0x102d   : > { %v1985_v39 = vadd.f32 %v1978_v31, %v1819_v57  ;;  %v3141_v1 = vpop.f32.mrb[45].mxu1  ;;  %v2313_v57 = vadd.f32 %v2847_v5, %v3800_v25  ;;  %v3288_v31 = vld [vmem:[%s2379_s2 + $0x20] sm:$0xff]  }
0x102e   : > { %v1981_v28 = vpop.f32.mrb[46].mxu1  ;;  %v3290_v1 = vld [vmem:[%s2379_s2 + $0x30] sm:$0xff]  }
0x102f   : > { %v3142_v29 = vpop.f32.mrb[47].mxu1  ;;  %v3879_v58 = vadd.f32 %v2313_v57, %v3579_v18  ;;  %v3291_v28 = vld [vmem:[%s2379_s2 + $0x38] sm:$0xff]  }
0x1030   : > { %v3292_v29 = vld [vmem:[%s3917_s22] sm:$0xff]  }
0x1031   : > { %v2325_v20 = vmul.f32 %v3879_v58, %v3879_v58 }
0x108c   : > { %v2046_v30 = vpop.xlane.xlu0 %2045 }
0x108d   : > { %3326 = vrcp.f32 %v2046_v30  ;;  %v3293_v30 = vld [vmem:[%s3917_s22 + $0x8] sm:$0xff]  }
0x1090   : > { %v2148_v35 = vpop.permute.xlu0 %2147 }
0x1091   : > { %v2153_v38 = vsel %vm1028_vm1, %v2148_v35, 0  ;;  %v3296_v35 = vld [vmem:[%s3917_s22 + $0x20] sm:$0xff]  }
0x1097   : > { %v3327_v33 = vpop.eup %3326 }
0x1098   : > { %v2048_v34 = vmul.f32 %v3327_v33, %v3325_v26  ;;  %v3286_v26 = vld [vmem:[%s2379_s2 + $0x10] sm:$0xff]  }
0x1099   : > { %v3294_v33 = vld [vmem:[%s3917_s22 + $0x10] sm:$0xff]  }
0x109a   : > { %v2049_v37 = vpack.c.bf16 %v2048_v34, %v2048_v34  ;;  %v3295_v34 = vld [vmem:[%s3917_s22 + $0x18] sm:$0xff]  }
0x109c   : > { %3152 = vmatmul.mubr.msk.bf16.vlgmr.msra.gmra.mrb[48].mxu1 %vm1028_vm1, %v2049_v37  ;;  %v3297_v37 = vld [vmem:[%s3917_s22 + $0x28] sm:$0xff]  }
0x109d   : > { %3162 = vmatpush3.bf16.xpose.msra.mxu1 %v2153_v38  ;;  %3163 = vmatprep.mubr.msk.bf16.mxu1 %vm3395_vm0, %v3394_v2 }
0x109e   : > { %3173 = vmatprep.subr.bf16.mxu1 %v3394_v2 }
0x10a4   : > { %3164 = vmatmul.mubr.msk.bf16.vlgmr.msra.gmra.mrb[52].mxu1 %vm1028_vm1, %v2146_v60 }
0x10a5   : > { %3174 = vmatpush3.bf16.msra.mxu1 %v3754_v53  ;;  %3175 = vmatprep.mubr.msk.bf16.mxu1 %vm3395_vm0, %v3394_v2 }
0x10a6   : > { %3199 = vmatprep.subr.bf16.mxu1 %v3394_v2 }
0x116f   : > { %v2092_v40 = vpop.f32.mrb[48].mxu1 }
0x1170   : > { %v2098_v41 = vpack.c.bf16 %v2092_v40, %v2092_v40  ;;  %v3153_v42 = vpop.f32.mrb[49].mxu1 }
0x1171   : > { %v2095_v43 = vpop.f32.mrb[50].mxu1 }
0x1172   : > { %v3154_v44 = vpop.f32.mrb[51].mxu1  ;;  %3158 = vmatmul.mubr.msk.bf16.vlgmr.msra.gmra.mrb[40].mxu0 %vm1028_vm1, %v2098_v41 }
0x1173   : > { %3169 = vmatprep.mubr.msk.bf16.mxu0 %vm3395_vm0, %v3394_v2 }
0x1177   : > { %v2189_v46 = vpop.f32.mrb[52].mxu1 }
0x1178   : > { %v2195_v53 = vsel %vm3788_vm4, -1e+30, %v2189_v46  ;;  %v3165_v45 = vpop.f32.mrb[53].mxu1 }
0x1179   : > { %v2192_v47 = vpop.f32.mrb[54].mxu1  ;;  %v2196_v49 = vsel %vm1028_vm1, %v2195_v53, -inf }
0x117a   : > { %2197 = vmax.xlane.f32.xlu1 %v2196_v49  ;;  %v3166_v50 = vpop.f32.mrb[55].mxu1 }
0x118b   : > { %2208 = vrot.lane.b32.xlu1 %v3779_v32, %s3398_s24  ;;  %s2396_s24 = scalar_lea.vmem %s4019_s14, %s3384_s0 }
0x1207   : > { %v2198_v51 = vpop.xlane.xlu1 %2197 }
0x1208   : > { %v2199_v52 = vsub.f32 %v2195_v53, %v2198_v51 }
0x120a   : > { %v2200_v6 = vmul.f32 1.442695, %v2199_v52 }
0x120b   : > { %v2209_v54 = vpop.permute.xlu1 %2208 }
0x120c   : > { %3328 = vpow2.f32 %v2200_v6  ;;  %v2214_v55 = vsel %vm1091_vm3, %v2209_v54, 0 }
0x120d   : > { %3168 = vmatpush3.bf16.msra.mxu0 %v2214_v55 }
0x120e   : > { %3179 = vmatprep.subr.bf16.mxu0 %v3394_v2 }
0x1216   : > { %v3329_v56 = vpop.eup %3328 }
0x1217   : > { %v2202_v32 = vsel %vm1028_vm1, %v3329_v56, 0.0 }
0x1218   : > { %2203 = vadd.xlane.f32.xlu0 %v2202_v32 }
0x121c   : > { %2321 = vadd.xlane.f32.xlu0 %v3879_v58 }
0x1245   : > { %v2136_v59 = vpop.f32.mrb[40].mxu0 }
0x1246   : > { %v2143_v61 = vadd.f32 %v2136_v59, %v1985_v39  ;;  %v3159_v62 = vpop.f32.mrb[41].mxu0  ;;  %v3289_v39 = vld [vmem:[%s2379_s2 + $0x28] sm:$0xff]   ;;  %v2849_v59 = vld [vmem:[%s2319_s27] ss:$0 sm:$0xff] }
0x1247   : > { %v2139_v63 = vpop.f32.mrb[42].mxu0 }
0x1248   : > { %v3160_v0 = vpop.f32.mrb[43].mxu0 }
0x12a5   : > { %v2204_v3 = vpop.xlane.xlu0 %2203 }
0x12a6   : > { %3330 = vrcp.f32 %v2204_v3 }
0x12a9   : > { %v2322_v38 = vpop.xlane.xlu0 %2321 }
0x12aa   : > { %v2331_v40 = vmul.f32 0.03125, %v2322_v38 }
0x12ac   : > { %v2335_v53 = vmul.f32 %v2331_v40, %v2331_v40 }
0x12b0   : > { %v3331_v36 = vpop.eup %3330 }
0x12b1   : > { %v2206_v4 = vmul.f32 %v3331_v36, %v3329_v56  ;;  %v2341_v56 = vsub.f32 %v3879_v58, %v2331_v40  ;;  %v3298_v58 = vld [vmem:[%s3917_s22 + $0x30] sm:$0xff]  }
0x12b3   : > { %v2207_v7 = vpack.c.bf16 %v2206_v4, %v2206_v4 }
0x12b5   : > { %3170 = vmatmul.mubr.msk.bf16.vlgmr.msra.gmra.mrb[44].mxu0 %vm1028_vm1, %v2207_v7 }
0x12b6   : > { %3195 = vmatprep.mubr.msk.bf16.mxu0 %vm3395_vm0, %v3394_v2 }
0x1388   : > { %v2250_v25 = vpop.f32.mrb[44].mxu0 }
0x1389   : > { %v2256_v18 = vpack.c.bf16 %v2250_v25, %v2250_v25  ;;  %v3171_v8 = vpop.f32.mrb[45].mxu0 }
0x138a   : > { %v2253_v9 = vpop.f32.mrb[46].mxu0  ;;  %v3299_v8 = vld [vmem:[%s3917_s22 + $0x38] sm:$0xff]   ;;  %s2514_s22 = scalar_lea.vmem %s4021_s16, %s3384_s0 }
0x138b   : > { %v3172_v13 = vpop.f32.mrb[47].mxu0  ;;  %3176 = vmatmul.mubr.msk.bf16.vlgmr.msra.gmra.mrb[56].mxu1 %vm1028_vm1, %v2256_v18  ;;  %v2851_v9 = vld [vmem:[%s2396_s24] ss:$0 sm:$0xff] }
0x138c   : > { %3215 = vmatprep.mubr.msk.bf16.mxu1 %vm3395_vm0, %v3394_v2  ;;  %3200 = vmatpush3.bf16.msra.mxu1 %v3292_v29 }
0x138d   : > { %3201 = vmatprep.subr.bf16.mxu1 %v3394_v2 }
0x1390   : > { %3202 = vmatpush3.bf16.msra.mxu1 %v3293_v30 }
0x1391   : > { %3203 = vmatprep.subr.bf16.mxu1 %v3394_v2 }
0x1394   : > { %3204 = vmatpush3.bf16.msra.mxu1 %v3294_v33 }
0x1395   : > { %3205 = vmatprep.subr.bf16.mxu1 %v3394_v2 }
0x1398   : > { %3206 = vmatpush3.bf16.msra.mxu1 %v3295_v34 }
0x1399   : > { %3207 = vmatprep.subr.bf16.mxu1 %v3394_v2 }
0x139c   : > { %3208 = vmatpush3.bf16.msra.mxu1 %v3296_v35 }
0x139d   : > { %3209 = vmatprep.subr.bf16.mxu1 %v3394_v2 }
0x13a0   : > { %3210 = vmatpush3.bf16.msra.mxu1 %v3297_v37 }
0x13a1   : > { %3211 = vmatprep.subr.bf16.mxu1 %v3394_v2 }
0x13a4   : > { %3212 = vmatpush3.bf16.msra.mxu1 %v3298_v58 }
0x13a5   : > { %3213 = vmatprep.subr.bf16.mxu1 %v3394_v2 }
0x13a8   : > { %3214 = vmatpush3.bf16.msra.mxu1 %v3299_v8 }
0x145e   : > { %v2294_v48 = vpop.f32.mrb[56].mxu1 }
0x145f   : > { %v2301_v11 = vadd.f32 %v2294_v48, %v2143_v61  ;;  %v3177_v12 = vpop.f32.mrb[57].mxu1 }
0x1460   : > { %v2297_v24 = vpop.f32.mrb[58].mxu1 }
0x1461   : > { %v2314_v14 = vadd.f32 %v2847_v5, %v2301_v11  ;;  %v3178_v15 = vpop.f32.mrb[59].mxu1 }
0x1463   : > { %v3889_v16 = vadd.f32 %v2314_v14, %v3581_v19  ;;  %v3284_v19 = vld [vmem:[%s2379_s2] sm:$0xff]   ;;  %s2317_s2 = scalar_lea.vmem %s4016_s11, %s3384_s0 }
0x1464   : > { %3180 = vmatpush3.bf16.msra.mxu0 %v3284_v19  ;;  %v2848_v5 = vld [vmem:[%s2317_s2] ss:$0 sm:$0xff]  ;;  %s2615_s2 = scalar_lea.vmem %s4023_s18, %s3384_s0 }
0x1465   : > { %2323 = vadd.xlane.f32.xlu0 %v3889_v16  ;;  %v2326_v17 = vmul.f32 %v3889_v16, %v3889_v16  ;;  %3181 = vmatprep.subr.bf16.mxu0 %v3394_v2 }
0x1467   : > { %2329 = vadd.xlane.f32.xlu1 %v2326_v17 }
0x1468   : > { %3182 = vmatpush3.bf16.msra.mxu0 %v3285_v22 }
0x1469   : > { %2327 = vadd.xlane.f32.xlu0 %v2325_v20  ;;  %3183 = vmatprep.subr.bf16.mxu0 %v3394_v2 }
0x146c   : > { %3184 = vmatpush3.bf16.msra.mxu0 %v3286_v26 }
0x146d   : > { %3185 = vmatprep.subr.bf16.mxu0 %v3394_v2 }
0x1470   : > { %3186 = vmatpush3.bf16.msra.mxu0 %v3287_v27 }
0x1471   : > { %3187 = vmatprep.subr.bf16.mxu0 %v3394_v2 }
0x1474   : > { %3188 = vmatpush3.bf16.msra.mxu0 %v3288_v31 }
0x1475   : > { %3189 = vmatprep.subr.bf16.mxu0 %v3394_v2 }
0x1478   : > { %2372 = vperm.xlu1 %3259, %v665_v21   ;;  %3190 = vmatpush3.bf16.msra.mxu0 %v3289_v39 }
0x1479   : > { %3191 = vmatprep.subr.bf16.mxu0 %v3394_v2 }
0x147c   : > { %3192 = vmatpush3.bf16.msra.mxu0 %v3290_v1 }
0x147d   : > { %3193 = vmatprep.subr.bf16.mxu0 %v3394_v2  ;;  %v2861_v2 = vld [vmem:[%s2514_s22] ss:$0 sm:$0xff]  ;;  %s2674_s22 = sshll.u32 %s3400_s25, 4  ;;  %s2675_s22 = int_to_ptr.vmem [resolvable:$true] %s2674_s22 }
0x147e   : > { %s3340_s26 = scalar_lea.vmem %s2675_s22, 256  ;;  %p3347_p9 = scmp.lt.s32.totalorder %s2675_s22, %s2675_s22 }
0x147f   : > { %2367 = vperm.xlu0 %3258, %v664_v23   ;;  %p3341_p6 = scmp.ne.s32.totalorder %s2675_s22, %s3340_s26  ;;  %p3348_p10 = scmp.lt.s32.totalorder %s3340_s26, %s3340_s26 }
0x1480   : > { %3194 = vmatpush3.bf16.msra.mxu0 %v3291_v28 }
0x1481   : > { %p3342_p7 = pnand %p3341_p6, %p3969_p5  ;;  %p3349_p11 = por %p3348_p10, %p3347_p9 }
0x1483   : > { %p3343_p8 = pneg %p3342_p7 }
0x1485   : > { %p3350_p12 = pnand %p3349_p11, %p3343_p8 }
0x14f2   : > { %v2324_v60 = vpop.xlane.xlu0 %2323 }
0x14f3   : > { %v2332_v41 = vmul.f32 0.03125, %v2324_v60 }
0x14f4   : > { %v2330_v42 = vpop.xlane.xlu1 %2329 }
0x14f5   : > { %v2336_v43 = vmul.f32 %v2332_v41, %v2332_v41  ;;  %v2334_v44 = vmul.f32 0.03125, %v2330_v42  ;;  %v2342_v54 = vsub.f32 %v3889_v16, %v2332_v41 }
0x14f6   : > { %v2328_v46 = vpop.xlane.xlu0 %2327 }
0x14f7   : > { %v2338_v45 = vsub.f32 %v2334_v44, %v2336_v43  ;;  %v2333_v47 = vmul.f32 0.03125, %v2328_v46 }
0x14f8   : > { %v3941_v3 = vpop.permute.xlu1 %2372 }
0x14f9   : > { %v2340_v49 = vmax.f32 %v2338_v45, 0.0  ;;  %v2337_v50 = vsub.f32 %v2333_v47, %v2335_v53  ;;  %v2870_v47 = vld [vmem:[%s2613_s28] ss:$0 sm:$0xff] }
0x14fb   : > { %v2344_v51 = vadd.f32 1e-05, %v2340_v49  ;;  %v2339_v52 = vmax.f32 %v2337_v50, 0.0  ;;  %v2871_v50 = vld [vmem:[%s2615_s2] ss:$0 sm:$0xff] }
0x14fd   : > { %3332 = vrsqrt.f32 %v2344_v51  ;;  %v2343_v6 = vadd.f32 1e-05, %v2339_v52 }
0x14fe   : > { %v3943_v36 = vpop.permute.xlu0 %2367 }
0x14ff   : > { %3334 = vrsqrt.f32 %v2343_v6 }
0x1507   : > { %v3333_v55 = vpop.eup %3332 }
0x1508   : > { %v2348_v57 = vmul.f32 %v3333_v55, %v2342_v54 }
0x1509   : > { %v3335_v32 = vpop.eup %3334 }
0x150a   : > { %v2356_v61 = vmul.f32 %v2848_v5, %v2348_v57  ;;  %v2347_v62 = vmul.f32 %v3335_v32, %v2341_v56 }
0x150c   : > { %v2364_v63 = vadd.f32 %v2849_v59, %v2356_v61  ;;  %v2355_v0 = vmul.f32 %v2848_v5, %v2347_v62 }
0x150e   : > { %v2363_v4 = vadd.f32 %v2849_v59, %v2355_v0  ;;  %v2376_v7 = vmul.f32 %v3941_v3, %v2364_v63 }
0x1510   : > { %v2375_v25 = vmul.f32 %v3943_v36, %v2363_v4 }
0x1512   : > { %v2377_v18 = vpack.c.bf16 %v2376_v7, %v2375_v25 }
0x1514   : > { %3196 = vmatmul.mubr.bf16.vlgmr.msra.gmra.mrb[48].mxu0 %v2377_v18 }
0x15e7   : > { %v2486_v13 = vpop.f32.mrb[48].mxu0 }
0x15e8   : > { %v2487_v10 = vadd.f32 %v2851_v9, %v2486_v13  ;;  %v3197_v48 = vpop.f32.mrb[49].mxu0 }
0x15e9   : > { %v2489_v11 = vpop.f32.mrb[50].mxu0 }
0x15ea   : > { %v2490_v12 = vadd.f32 %v2851_v9, %v2489_v11  ;;  %v3198_v24 = vpop.f32.mrb[51].mxu0  ;;  %v2493_v14 = vmax.f32 %v2487_v10, 0.0 }
0x15ec   : > { %v2494_v15 = vmax.f32 %v2490_v12, 0.0 }
0x15ee   : > { %v2495_v16 = vpack.c.bf16 %v2494_v15, %v2493_v14 }
0x15f0   : > { %3216 = vmatmul.mubr.bf16.vlgmr.msra.gmra.mrb[60].mxu1 %v2495_v16 }
0x16c3   : > { %v2604_v17 = vpop.f32.mrb[60].mxu1 }
0x16c4   : > { %v2605_v20 = vadd.f32 %v2861_v2, %v2604_v17  ;;  %v3217_v21 = vpop.f32.mrb[61].mxu1 }
0x16c5   : > { %v2607_v19 = vpop.f32.mrb[62].mxu1 }
0x16c6   : > { %v2611_v22 = vadd.f32 %v2605_v20, %v2375_v25  ;;  %v2608_v23 = vadd.f32 %v2861_v2, %v2607_v19  ;;  %v3218_v26 = vpop.f32.mrb[63].mxu1 }
0x16c8   : > { %v2612_v27 = vadd.f32 %v2608_v23, %v2376_v7  ;;  %2617 = vadd.xlane.f32.xlu0 %v2611_v22  ;;  %v2621_v31 = vmul.f32 %v2611_v22, %v2611_v22 }
0x16ca   : > { %2619 = vadd.xlane.f32.xlu1 %v2612_v27  ;;  %v2622_v39 = vmul.f32 %v2612_v27, %v2612_v27 }
0x16cc   : > { %2623 = vadd.xlane.f32.xlu0 %v2621_v31 }
0x16d0   : > { %2625 = vadd.xlane.f32.xlu0 %v2622_v39 }
0x1755   : > { %v2618_v1 = vpop.xlane.xlu0 %2617 }
0x1756   : > { %v2627_v28 = vmul.f32 0.03125, %v2618_v1 }
0x1757   : > { %v2620_v29 = vpop.xlane.xlu1 %2619 }
0x1758   : > { %v2631_v33 = vmul.f32 %v2627_v28, %v2627_v28  ;;  %v2628_v34 = vmul.f32 0.03125, %v2620_v29  ;;  %v2637_v53 = vsub.f32 %v2611_v22, %v2627_v28 }
0x1759   : > { %v2624_v30 = vpop.xlane.xlu0 %2623 }
0x175a   : > { %v2629_v35 = vmul.f32 0.03125, %v2624_v30  ;;  %v2632_v60 = vmul.f32 %v2628_v34, %v2628_v34  ;;  %v2638_v51 = vsub.f32 %v2612_v27, %v2628_v34 }
0x175c   : > { %v2633_v37 = vsub.f32 %v2629_v35, %v2631_v33 }
0x175d   : > { %v2626_v38 = vpop.xlane.xlu0 %2625 }
0x175e   : > { %v2635_v40 = vmax.f32 %v2633_v37, 0.0  ;;  %v2630_v41 = vmul.f32 0.03125, %v2626_v38 }
0x1760   : > { %v2639_v42 = vadd.f32 1e-05, %v2635_v40  ;;  %v2634_v43 = vsub.f32 %v2630_v41, %v2632_v60 }
0x1762   : > { %3336 = vrsqrt.f32 %v2639_v42  ;;  %v2636_v44 = vmax.f32 %v2634_v43, 0.0 }
0x1764   : > { %v2640_v46 = vadd.f32 1e-05, %v2636_v44 }
0x1766   : > { %3338 = vrsqrt.f32 %v2640_v46 }
0x176c   : > { %v3337_v45 = vpop.eup %3336 }
0x176d   : > { %v2643_v49 = vmul.f32 %v3337_v45, %v2637_v53 }
0x176f   : > { %v2651_v52 = vmul.f32 %v2870_v47, %v2643_v49 }
0x1770   : > { %v3339_v6 = vpop.eup %3338 }
0x1771   : > { %v2644_v54 = vmul.f32 %v3339_v6, %v2638_v51  ;;  %v2659_v55 = vadd.f32 %v2871_v50, %v2651_v52 }
0x1773   : > { %v2652_v5 = vmul.f32 %v2870_v47, %v2644_v54  ;;  %v2661_v56 = vmul.f32 %v2659_v55, %v3943_v36 }
0x1775   : > { %v2660_v57 = vadd.f32 %v2871_v50, %v2652_v5  ;;  %2663 = vst [vmem:[#allocation3] sm:$0xff] %v2661_v56 }
0x1777   : > { %v2662_v32 = vmul.f32 %v2660_v57, %v3941_v3 }
0x1779   : > { %2664 = vst [vmem:[#allocation3 + $0x8] sm:$0xff] %v2662_v32 }
0x177a   : > { %3353 = shalt.err (!%p3350_p12)
}
0x177b   : > { %s3354_s28 = scalar_lea.hbm %s4024_s19, 256 }
0x177c   : > { %p3355_p13 = scmp.ne.s32.totalorder %s4024_s19, %s3354_s28  ;;  %p3360_p2 = scmp.lt.u32.totalorder %s3354_s28, %s4024_s19 }
0x177e   : > { %p3356_p0 = pnand %p3355_p13, %p3969_p5 }
0x1780   : > { %p3357_p1 = pneg %p3356_p0 }
0x1782   : > { %p3362_p3 = pnand %p3360_p2, %p3357_p1 }
0x1784   : > { %3365 = shalt.err (!%p3362_p3)
}
0x1785   : > { %s3401_s26 = smov 128   ;;  %s3402_s4 = smov 8  }
0x1786   : > { %3220 = dma.vmem_to_hbm [thread:$0]  (%p3969_p5), %s2675_s22, 256, %s4024_s19, [#allocation4], %s3401_s26, %s3401_s26, %s3402_s4  }
0x1787   : > { %3379 = dma.done.wait (%p3969_p5), [#allocation4], 256  }
0x1788   : > { %3381 = vsyncadd (%p3969_p5), [#allocation4], 4294967040 }
0x1789 PF: > { %s30_s20 = sadd.s32 1, %s3392_s20   ;;  %s4042_s0 = smov %s3388_s30 }
0x178a   : > { %p27_p4 = scmp.ge.s32.totalorder %s30_s20, 4   ;;  %s4043_s30 = smov %s4045_s1 }
0x178c   :  { %29 = sbr.rel (!%p27_p4) target bundleno = 8 (0x8), region = 151 }
0x1793   :  { %2690 = vsyncpa [#allocation4], 1 }
0x1794   :  { %2692 = vsyncpa [#allocation4 + $0x1], 1 }

</bundles_post_ra>
